<compile_context>
chip_gen: v6e
topology: v6e:2x2x1
jax: 0.10.0
libtpu: 0.0.40
codegen_flags: <defaults>
</compile_context>

<pallas_src>
import math
import numpy as np
import jax
import jax.numpy as jnp
from jax.experimental import pallas as pl
from jax.experimental.pallas import tpu as pltpu

NUMBER_NODES = 6                 # nodes of the underlying graph G
Q = NUMBER_NODES + 1             # + ground-node wire (encoder adds it)
D_STATE = 1 << Q                 # 128 amplitudes -> one full lane row
NPAD = 128                       # lane-padded node-output width
SUBLANES = 8


# ----------------------------- Pallas kernel --------------------------------
def qsim_kernel(gates_ref, zsign_ref, mask_ref, out_ref):
    """One grid step == BB batch elements: apply fused gates, measure, mask."""
    bb = gates_ref.shape[0]          # batch elements per grid step
    ng = gates_ref.shape[1]          # fused gate count per batch (1 after total fusion)
    d = gates_ref.shape[2]           # 2^Q statevector length (128)

    # Stacked statevector: sublanes 0:8 hold Re(psi), 8:16 hold Im(psi).
    # Only row 0 (and its imaginary partner, row 8) carry the 2^Q amplitudes;
    # the other rows are sublane padding and stay exactly zero.
    row = jax.lax.broadcasted_iota(jnp.int32, (2 * SUBLANES, d), 0)
    col = jax.lax.broadcasted_iota(jnp.int32, (2 * SUBLANES, d), 1)
    s0 = jnp.where((row == 0) & (col == 0), 1.0, 0.0).astype(jnp.float32)

    # Gate-major, batch-minor static unroll: the bb independent dependency
    # chains are interleaved so each dependent MXU matmul of one chain hides
    # behind the matmuls of the other chains.
    states = [s0] * bb
    for g in range(ng):
        nxt = []
        for b in range(bb):
            m = gates_ref[b, g]                              # (D, 2D): [Re(U^T) | Im(U^T)]
            res = jnp.dot(states[b], m,
                          preferred_element_type=jnp.float32)  # one MXU matmul
            sr = res[:, :d]                                  # [psi_r; psi_i] @ Re(U^T)
            si = res[:, d:]                                  # [psi_r; psi_i] @ Im(U^T)
            new_r = sr[:SUBLANES, :] - si[SUBLANES:, :]
            new_i = si[:SUBLANES, :] + sr[SUBLANES:, :]
            nxt.append(jnp.concatenate([new_r, new_i], axis=0))
        states = nxt

    zsign = zsign_ref[...]
    for b in range(bb):
        pr = states[b][:SUBLANES, :]
        pi = states[b][SUBLANES:, :]
        prob = pr * pr + pi * pi                             # |psi|^2  (8, D), rows 1..7 zero
        ev = jnp.dot(prob, zsign,
                     preferred_element_type=jnp.float32)     # PauliZ expvals (8, NPAD)
        # (ev + 1)/2 scattered to subgraph-node lanes via mask; single row out.
        out_ref[b, :, :] = mask_ref[b, :, :] * (ev[0:1, :] + 1.0) * 0.5


def _choose_block_batch(B):
    # <=8 batches/step keeps the double-buffered gate block well inside the
    # v5e 16 MiB scoped-VMEM default and v7x's 64 MiB physical VMEM; the
    # ceil(B/2) cap keeps >=2 grid steps so v7x megacore gets both TCs busy.
    return max(1, min(8, -(-B // 2)))


def quantum_net_forward(gates, zsign, mask, block_batch=None):
    B, NG, D, D2 = gates.shape
    BB = _choose_block_batch(B) if block_batch is None else block_batch
    B_pad = -(-B // BB) * BB
    if B_pad != B:
        # Zero gate slabs -> zero statevector -> zero masked output for the
        # padded rows; they are sliced off below (no stale VMEM reaches out).
        gates = jnp.pad(gates, ((0, B_pad - B), (0, 0), (0, 0), (0, 0)))
        mask = jnp.pad(mask, ((0, B_pad - B), (0, 0), (0, 0)))

    out = pl.pallas_call(
        qsim_kernel,
        out_shape=jax.ShapeDtypeStruct((B_pad, 1, NPAD), jnp.float32),
        grid_spec=pltpu.PrefetchScalarGridSpec(
            num_scalar_prefetch=0,
            grid=(B_pad // BB,),                             # one step per BB batches
            in_specs=[
                # All fused gates for BB batches in one contiguous DMA.
                pl.BlockSpec((BB, NG, D, D2), lambda i: (i, 0, 0, 0)),
                # Constant index_map: zsign is DMA'd once, not per step.
                pl.BlockSpec((D, NPAD), lambda i: (0, 0)),
                pl.BlockSpec((BB, 1, NPAD), lambda i: (i, 0, 0)),
            ],
            out_specs=pl.BlockSpec((BB, 1, NPAD), lambda i: (i, 0, 0)),
        ),
        compiler_params=pltpu.CompilerParams(
            dimension_semantics=("parallel",)),              # batch axis across TCs (v7x)
    )(gates, zsign, mask)
    return out[:B]


# -------------------- host-side glue: gate construction ---------------------
_I2 = np.eye(2, dtype=np.complex128)
_H = (1.0 / math.sqrt(2.0)) * np.array([[1, 1], [1, -1]], dtype=np.complex128)


def _rx(t):
    c, s = math.cos(t / 2), math.sin(t / 2)
    return np.array([[c, -1j * s], [-1j * s, c]], dtype=np.complex128)


def _ry(t):
    c, s = math.cos(t / 2), math.sin(t / 2)
    return np.array([[c, -s], [s, c]], dtype=np.complex128)


def _rz(t):
    return np.array([[np.exp(-1j * t / 2), 0], [0, np.exp(1j * t / 2)]],
                    dtype=np.complex128)


def _embed_1q(U, wire, nq):
    # PennyLane convention: wire 0 is the most-significant bit.
    M = np.array([[1.0]], dtype=np.complex128)
    for q in range(nq):
        M = np.kron(M, U if q == wire else _I2)
    return M


def _cz(a, b, nq):
    dim = 1 << nq
    idx = np.arange(dim)
    ba = (idx >> (nq - 1 - a)) & 1
    bb = (idx >> (nq - 1 - b)) & 1
    diag = np.where((ba == 1) & (bb == 1), -1.0, 1.0).astype(np.complex128)
    return np.diag(diag)


def build_fused_gates(fake_index_full, feats, center_w, neigb_w, y_w, z_w,
                      totalnum, e_layers, d_layers, nq):
    """Ulayer.ecoder()+decoder() gate sequence, fused host-side.

    Consecutive 1-qubit gates on each wire are multiplied as 2x2s, a whole
    inter-CZ block becomes one kron product, and the (all-diagonal) CZ ring is
    folded into that block as a row scaling -> exactly e_layers + d_layers
    dense 2^Q x 2^Q unitaries per batch, independent of subgraph size.
    """
    fi = list(fake_index_full)          # includes ground wire as last entry
    L = len(fi)
    center = fi[-1]
    dim = 1 << nq
    idxs = np.arange(dim)

    pend = {}                           # wire -> accumulated 2x2 (left-multiplied)

    def apply1q(g2, w):
        pend[w] = g2 @ pend.get(w, _I2)

    def cz_ring_diag():
        diag = np.ones(dim, dtype=np.complex128)
        for j in range(L):
            a, b = fi[j], fi[(j + 1) % L]
            ba = (idxs >> (nq - 1 - a)) & 1
            bb = (idxs >> (nq - 1 - b)) & 1
            diag = diag * np.where((ba == 1) & (bb == 1), -1.0, 1.0)
        return diag

    gates = []

    def flush_block_with_cz():
        M = np.array([[1.0]], dtype=np.complex128)
        for q in range(nq):
            M = np.kron(M, pend.get(q, _I2))
        gates.append(cz_ring_diag()[:, None] * M)           # CZ-ring ∘ 1q-block
        pend.clear()

    # --- u_init: H + feature RX encoding (RX angles on a wire sum exactly) ---
    for j, w in enumerate(fi):
        apply1q(_H, w)
        apply1q(_rx(0.05 * math.pi * float(np.sum(feats[j]))), w)
    # --- encoder u_cov layers (u_init folds into layer 0's 1q block) ---
    for layer in range(e_layers):
        apply1q(_rx(float(center_w[layer, 0])), center)
        apply1q(_ry(float(center_w[layer, 1])), center)
        apply1q(_rz(float(center_w[layer, 2])), center)
        for w in fi[:-1]:
            apply1q(_rx(float(neigb_w[layer, 0])), w)
            apply1q(_ry(float(neigb_w[layer, 1])), w)
            apply1q(_rz(float(neigb_w[layer, 2])), w)
        flush_block_with_cz()
    # --- decoder ---
    if L - 1 < totalnum:
        y_sel, z_sel = y_w[:, fi], z_w[:, fi]
    else:
        y_sel, z_sel = y_w, z_w
    for layer in range(d_layers):
        if layer == 0:
            for j, w in enumerate(fi[:-1]):                  # init_circuit (no ground)
                apply1q(_rx(0.05 * math.pi * float(np.sum(feats[j]))), w)
        for j, w in enumerate(fi):
            apply1q(_ry(float(y_sel[layer, j])), w)
        for j, w in enumerate(fi):
            apply1q(_rz(float(z_sel[layer, j])), w)
        flush_block_with_cz()
    return gates


def build_gate_list_unfused(fake_index_full, feats, center_w, neigb_w, y_w, z_w,
                            totalnum, e_layers, d_layers, nq):
    """Gate-by-gate (unfused) sequence, used only for the numpy reference so it
    independently validates both levels of host-side fusion and the kernel."""
    fi = list(fake_index_full)
    L = len(fi)
    center = fi[-1]
    gates = []
    for j, w in enumerate(fi):
        gates.append(_embed_1q(_H, w, nq))
        ang = 0.05 * math.pi * float(np.sum(feats[j]))
        gates.append(_embed_1q(_rx(ang), w, nq))
    for layer in range(e_layers):
        gates.append(_embed_1q(_rx(float(center_w[layer, 0])), center, nq))
        gates.append(_embed_1q(_ry(float(center_w[layer, 1])), center, nq))
        gates.append(_embed_1q(_rz(float(center_w[layer, 2])), center, nq))
        for w in fi[:-1]:
            gates.append(_embed_1q(_rx(float(neigb_w[layer, 0])), w, nq))
            gates.append(_embed_1q(_ry(float(neigb_w[layer, 1])), w, nq))
            gates.append(_embed_1q(_rz(float(neigb_w[layer, 2])), w, nq))
        for j, w in enumerate(fi):
            gates.append(_cz(w, fi[(j + 1) % L], nq))
    if L - 1 < totalnum:
        y_sel, z_sel = y_w[:, fi], z_w[:, fi]
    else:
        y_sel, z_sel = y_w, z_w
    for layer in range(d_layers):
        if layer == 0:
            for j, w in enumerate(fi[:-1]):
                ang = 0.05 * math.pi * float(np.sum(feats[j]))
                gates.append(_embed_1q(_rx(ang), w, nq))
        for j, w in enumerate(fi):
            gates.append(_embed_1q(_ry(float(y_sel[layer, j])), w, nq))
        for j, w in enumerate(fi):
            gates.append(_embed_1q(_rz(float(z_sel[layer, j])), w, nq))
        for j, w in enumerate(fi):
            gates.append(_cz(w, fi[(j + 1) % L], nq))
    return gates


# ----------------------------------- main ------------------------------------
if __name__ == "__main__":
    e_layers, d_layers = 2, 2
    ground_wire = NUMBER_NODES
    FUSE_TOTAL = True            # collapse each batch's circuit to ONE unitary (NG=1)

    # Eight synthetic "subgraphs" over a 6-node graph: lists of wire indices
    # (forward's fake_index[idx] = [index_map[node] for node in subgraph]).
    fake_indices = [[0, 1, 2], [1, 3, 4, 5], [0, 2, 4], [2, 3, 5],
                    [0, 1, 2, 3, 4, 5], [1, 2], [3, 4, 5], [0, 5]]
    B = len(fake_indices)

    # Deterministic parameter init (matches the torch shapes / uniform bounds).
    key = jax.random.PRNGKey(0)
    kc, kn, ky, kz, kf = jax.random.split(key, 5)
    init_bound = 0.05 * math.pi
    center_w = np.asarray(jax.random.uniform(kc, (e_layers, 3),
                                             minval=-init_bound, maxval=init_bound))
    neigb_w = np.asarray(jax.random.uniform(kn, (e_layers, 3),
                                            minval=-init_bound, maxval=init_bound))
    y_w = np.asarray(jax.random.uniform(ky, (d_layers, NUMBER_NODES + 1),
                                        minval=-init_bound, maxval=init_bound))
    z_w = np.asarray(jax.random.uniform(kz, (d_layers, NUMBER_NODES + 1),
                                        minval=-init_bound, maxval=init_bound))
    # TODO(synk): real model derives 5 networkx centrality features per node
    # (incl. the added ground node); synthetic deterministic features used here.
    feats_all = np.asarray(jax.random.uniform(kf, (B, NUMBER_NODES + 1, 5)))

    fused_lists, ref_lists = [], []
    for idx, fidx in enumerate(fake_indices):
        fi = list(fidx) + [ground_wire]
        feats = feats_all[idx, :len(fi), :]
        blocks = build_fused_gates(fi, feats, center_w, neigb_w, y_w, z_w,
                                   NUMBER_NODES, e_layers, d_layers, Q)
        if FUSE_TOTAL:
            # No mid-circuit measurement -> fold all blocks into U_total.
            u_tot = np.eye(D_STATE, dtype=np.complex128)
            for U in blocks:
                u_tot = U @ u_tot
            blocks = [u_tot]
        fused_lists.append(blocks)
        ref_lists.append(build_gate_list_unfused(fi, feats, center_w, neigb_w, y_w,
                                                 z_w, NUMBER_NODES, e_layers,
                                                 d_layers, Q))

    NG = len(fused_lists[0])                 # 1 (fused) or e_layers + d_layers
    assert all(len(gl) == NG for gl in fused_lists)   # uniform -> no identity padding

    # Merged real/imag planes of U^T: one (D, 2D) slab per fused gate.
    gates_np = np.zeros((B, NG, D_STATE, 2 * D_STATE), np.float32)
    for b, gl in enumerate(fused_lists):
        for g, U in enumerate(gl):
            UT = U.T                                      # pre-transpose for psi @ U^T
            gates_np[b, g, :, :D_STATE] = UT.real.astype(np.float32)
            gates_np[b, g, :, D_STATE:] = UT.imag.astype(np.float32)
    gates = jnp.asarray(gates_np)

    # PauliZ sign table per wire (only the number_nodes measured wires matter).
    idxs = np.arange(D_STATE)
    zsign_np = np.zeros((D_STATE, NPAD), np.float32)
    for k in range(NUMBER_NODES):
        zsign_np[:, k] = 1.0 - 2.0 * ((idxs >> (Q - 1 - k)) & 1)
    zsign = jnp.asarray(zsign_np)

    # Scatter mask: outputs[idx][fake_index[idx][j]] gets a value, rest stay 0.
    mask_np = np.zeros((B, 1, NPAD), np.float32)
    for idx, fidx in enumerate(fake_indices):
        for k in fidx:
            mask_np[idx, 0, k] = 1.0
    mask = jnp.asarray(mask_np)

    out = quantum_net_forward(gates, zsign, mask)
    out = jax.block_until_ready(out)
    outputs = np.asarray(out)[:, 0, :NUMBER_NODES]        # (B, number_nodes)

    # Pure-numpy reference of the same statevector evolution using the
    # UNFUSED gate list (validates host-side fusion levels and the kernel).
    # TODO(synk): torch path uses 15000-shot classical-shadow expvals and a
    # Renyi-entropy reconstruct_theta loop; exact expectations used instead.
    ref = np.zeros((B, NUMBER_NODES), np.float32)
    for b in range(B):
        psi = np.zeros(D_STATE, np.complex128)
        psi[0] = 1.0
        for U in ref_lists[b]:
            psi = U @ psi
        prob = np.abs(psi) ** 2
        for k in fake_indices[b]:
            ev = float(prob @ zsign_np[:, k].astype(np.float64))
            ref[b, k] = (ev + 1.0) / 2.0

    assert np.allclose(outputs, ref, atol=1e-3), (outputs, ref)
    print("KERNEL_OK")
</pallas_src>

<mosaic_0001>
module attributes {stable_mosaic.version = 11 : i64} {
  func.func @qsim_kernel(%arg0: i32, %arg1: memref<4x1x128x256xf32, #tpu.memory_space<vmem>>, %arg2: memref<128x128xf32, #tpu.memory_space<vmem>>, %arg3: memref<4x1x128xf32, #tpu.memory_space<vmem>>, %arg4: memref<4x1x128xf32, #tpu.memory_space<vmem>>) attributes {dimension_semantics = [#tpu.dimension_semantics<parallel>], iteration_bounds = array<i64: 2>, scalar_prefetch = 0 : i64, scratch_operands = 0 : i64, tpu.core_type = #tpu.core_type<tc>, window_params = [{transform_indices = @transform_0, window_bounds = array<i64: 4, 1, 128, 256>}, {pipeline_mode = #tpu.pipeline_mode<synchronous>, transform_indices = @transform_1, window_bounds = array<i64: 128, 128>}, {transform_indices = @transform_2, window_bounds = array<i64: 4, 1, 128>}, {transform_indices = @transform_3, window_bounds = array<i64: 4, 1, 128>}]} {
    %0 = tpu.iota {dimensions = array<i32: 0>} : vector<16x128xi32>
    %1 = tpu.iota {dimensions = array<i32: 1>} : vector<16x128xi32>
    %c0_i32 = arith.constant 0 : i32
    %2 = vector.broadcast %c0_i32 : i32 to vector<16x128xi32>
    %3 = arith.cmpi eq, %0, %2 : vector<16x128xi32>
    %c0_i32_0 = arith.constant 0 : i32
    %4 = vector.broadcast %c0_i32_0 : i32 to vector<16x128xi32>
    %5 = arith.cmpi eq, %1, %4 : vector<16x128xi32>
    %6 = arith.andi %3, %5 : vector<16x128xi1>
    %cst = arith.constant 1.000000e+00 : f32
    %cst_1 = arith.constant 0.000000e+00 : f32
    %7 = vector.broadcast %cst : f32 to vector<16x128xf32>
    %8 = vector.broadcast %cst_1 : f32 to vector<16x128xf32>
    %9 = arith.select %6, %7, %8 : vector<16x128xi1>, vector<16x128xf32>
    %c0 = arith.constant 0 : index
    %c0_2 = arith.constant 0 : index
    %c0_3 = arith.constant 0 : index
    %c0_4 = arith.constant 0 : index
    %10 = vector.load %arg1[%c0, %c0_2, %c0_3, %c0_4] : memref<4x1x128x256xf32, #tpu.memory_space<vmem>>, vector<1x1x128x256xf32>
    %11 = vector.shape_cast %10 : vector<1x1x128x256xf32> to vector<128x256xf32>
    %cst_5 = arith.constant dense<0.000000e+00> : vector<16x256xf32>
    %12 = tpu.matmul %9, %11, %cst_5 {dimension_numbers = #tpu.dot_dimension_numbers<[1], [0], [0], [1], [0, 0, 1, 1], [], []>} : vector<16x128xf32>, vector<128x256xf32>, vector<16x256xf32> -> vector<16x256xf32>
    %13 = vector.extract_strided_slice %12 {offsets = [0, 0], sizes = [16, 128], strides = [1, 1]} : vector<16x256xf32> to vector<16x128xf32>
    %14 = vector.extract_strided_slice %12 {offsets = [0, 128], sizes = [16, 128], strides = [1, 1]} : vector<16x256xf32> to vector<16x128xf32>
    %15 = vector.extract_strided_slice %13 {offsets = [0, 0], sizes = [8, 128], strides = [1, 1]} : vector<16x128xf32> to vector<8x128xf32>
    %16 = vector.extract_strided_slice %14 {offsets = [8, 0], sizes = [8, 128], strides = [1, 1]} : vector<16x128xf32> to vector<8x128xf32>
    %17 = arith.subf %15, %16 : vector<8x128xf32>
    %18 = vector.extract_strided_slice %14 {offsets = [0, 0], sizes = [8, 128], strides = [1, 1]} : vector<16x128xf32> to vector<8x128xf32>
    %19 = vector.extract_strided_slice %13 {offsets = [8, 0], sizes = [8, 128], strides = [1, 1]} : vector<16x128xf32> to vector<8x128xf32>
    %20 = arith.addf %18, %19 : vector<8x128xf32>
    %21 = tpu.concatenate %17, %20 in 0 : vector<8x128xf32>, vector<8x128xf32> -> vector<16x128xf32>
    %c1 = arith.constant 1 : index
    %c0_6 = arith.constant 0 : index
    %c0_7 = arith.constant 0 : index
    %c0_8 = arith.constant 0 : index
    %22 = vector.load %arg1[%c1, %c0_6, %c0_7, %c0_8] : memref<4x1x128x256xf32, #tpu.memory_space<vmem>>, vector<1x1x128x256xf32>
    %23 = vector.shape_cast %22 : vector<1x1x128x256xf32> to vector<128x256xf32>
    %cst_9 = arith.constant dense<0.000000e+00> : vector<16x256xf32>
    %24 = tpu.matmul %9, %23, %cst_9 {dimension_numbers = #tpu.dot_dimension_numbers<[1], [0], [0], [1], [0, 0, 1, 1], [], []>} : vector<16x128xf32>, vector<128x256xf32>, vector<16x256xf32> -> vector<16x256xf32>
    %25 = vector.extract_strided_slice %24 {offsets = [0, 0], sizes = [16, 128], strides = [1, 1]} : vector<16x256xf32> to vector<16x128xf32>
    %26 = vector.extract_strided_slice %24 {offsets = [0, 128], sizes = [16, 128], strides = [1, 1]} : vector<16x256xf32> to vector<16x128xf32>
    %27 = vector.extract_strided_slice %25 {offsets = [0, 0], sizes = [8, 128], strides = [1, 1]} : vector<16x128xf32> to vector<8x128xf32>
    %28 = vector.extract_strided_slice %26 {offsets = [8, 0], sizes = [8, 128], strides = [1, 1]} : vector<16x128xf32> to vector<8x128xf32>
    %29 = arith.subf %27, %28 : vector<8x128xf32>
    %30 = vector.extract_strided_slice %26 {offsets = [0, 0], sizes = [8, 128], strides = [1, 1]} : vector<16x128xf32> to vector<8x128xf32>
    %31 = vector.extract_strided_slice %25 {offsets = [8, 0], sizes = [8, 128], strides = [1, 1]} : vector<16x128xf32> to vector<8x128xf32>
    %32 = arith.addf %30, %31 : vector<8x128xf32>
    %33 = tpu.concatenate %29, %32 in 0 : vector<8x128xf32>, vector<8x128xf32> -> vector<16x128xf32>
    %c2 = arith.constant 2 : index
    %c0_10 = arith.constant 0 : index
    %c0_11 = arith.constant 0 : index
    %c0_12 = arith.constant 0 : index
    %34 = vector.load %arg1[%c2, %c0_10, %c0_11, %c0_12] : memref<4x1x128x256xf32, #tpu.memory_space<vmem>>, vector<1x1x128x256xf32>
    %35 = vector.shape_cast %34 : vector<1x1x128x256xf32> to vector<128x256xf32>
    %cst_13 = arith.constant dense<0.000000e+00> : vector<16x256xf32>
    %36 = tpu.matmul %9, %35, %cst_13 {dimension_numbers = #tpu.dot_dimension_numbers<[1], [0], [0], [1], [0, 0, 1, 1], [], []>} : vector<16x128xf32>, vector<128x256xf32>, vector<16x256xf32> -> vector<16x256xf32>
    %37 = vector.extract_strided_slice %36 {offsets = [0, 0], sizes = [16, 128], strides = [1, 1]} : vector<16x256xf32> to vector<16x128xf32>
    %38 = vector.extract_strided_slice %36 {offsets = [0, 128], sizes = [16, 128], strides = [1, 1]} : vector<16x256xf32> to vector<16x128xf32>
    %39 = vector.extract_strided_slice %37 {offsets = [0, 0], sizes = [8, 128], strides = [1, 1]} : vector<16x128xf32> to vector<8x128xf32>
    %40 = vector.extract_strided_slice %38 {offsets = [8, 0], sizes = [8, 128], strides = [1, 1]} : vector<16x128xf32> to vector<8x128xf32>
    %41 = arith.subf %39, %40 : vector<8x128xf32>
    %42 = vector.extract_strided_slice %38 {offsets = [0, 0], sizes = [8, 128], strides = [1, 1]} : vector<16x128xf32> to vector<8x128xf32>
    %43 = vector.extract_strided_slice %37 {offsets = [8, 0], sizes = [8, 128], strides = [1, 1]} : vector<16x128xf32> to vector<8x128xf32>
    %44 = arith.addf %42, %43 : vector<8x128xf32>
    %45 = tpu.concatenate %41, %44 in 0 : vector<8x128xf32>, vector<8x128xf32> -> vector<16x128xf32>
    %c3 = arith.constant 3 : index
    %c0_14 = arith.constant 0 : index
    %c0_15 = arith.constant 0 : index
    %c0_16 = arith.constant 0 : index
    %46 = vector.load %arg1[%c3, %c0_14, %c0_15, %c0_16] : memref<4x1x128x256xf32, #tpu.memory_space<vmem>>, vector<1x1x128x256xf32>
    %47 = vector.shape_cast %46 : vector<1x1x128x256xf32> to vector<128x256xf32>
    %cst_17 = arith.constant dense<0.000000e+00> : vector<16x256xf32>
    %48 = tpu.matmul %9, %47, %cst_17 {dimension_numbers = #tpu.dot_dimension_numbers<[1], [0], [0], [1], [0, 0, 1, 1], [], []>} : vector<16x128xf32>, vector<128x256xf32>, vector<16x256xf32> -> vector<16x256xf32>
    %49 = vector.extract_strided_slice %48 {offsets = [0, 0], sizes = [16, 128], strides = [1, 1]} : vector<16x256xf32> to vector<16x128xf32>
    %50 = vector.extract_strided_slice %48 {offsets = [0, 128], sizes = [16, 128], strides = [1, 1]} : vector<16x256xf32> to vector<16x128xf32>
    %51 = vector.extract_strided_slice %49 {offsets = [0, 0], sizes = [8, 128], strides = [1, 1]} : vector<16x128xf32> to vector<8x128xf32>
    %52 = vector.extract_strided_slice %50 {offsets = [8, 0], sizes = [8, 128], strides = [1, 1]} : vector<16x128xf32> to vector<8x128xf32>
    %53 = arith.subf %51, %52 : vector<8x128xf32>
    %54 = vector.extract_strided_slice %50 {offsets = [0, 0], sizes = [8, 128], strides = [1, 1]} : vector<16x128xf32> to vector<8x128xf32>
    %55 = vector.extract_strided_slice %49 {offsets = [8, 0], sizes = [8, 128], strides = [1, 1]} : vector<16x128xf32> to vector<8x128xf32>
    %56 = arith.addf %54, %55 : vector<8x128xf32>
    %57 = tpu.concatenate %53, %56 in 0 : vector<8x128xf32>, vector<8x128xf32> -> vector<16x128xf32>
    %c0_18 = arith.constant 0 : index
    %c0_19 = arith.constant 0 : index
    %58 = vector.load %arg2[%c0_18, %c0_19] : memref<128x128xf32, #tpu.memory_space<vmem>>, vector<128x128xf32>
    %59 = vector.extract_strided_slice %21 {offsets = [0, 0], sizes = [8, 128], strides = [1, 1]} : vector<16x128xf32> to vector<8x128xf32>
    %60 = vector.extract_strided_slice %21 {offsets = [8, 0], sizes = [8, 128], strides = [1, 1]} : vector<16x128xf32> to vector<8x128xf32>
    %61 = arith.mulf %59, %59 : vector<8x128xf32>
    %62 = arith.mulf %60, %60 : vector<8x128xf32>
    %63 = arith.addf %61, %62 : vector<8x128xf32>
    %cst_20 = arith.constant dense<0.000000e+00> : vector<8x128xf32>
    %64 = tpu.matmul %63, %58, %cst_20 {dimension_numbers = #tpu.dot_dimension_numbers<[1], [0], [0], [1], [0, 0, 1, 1], [], []>} : vector<8x128xf32>, vector<128x128xf32>, vector<8x128xf32> -> vector<8x128xf32>
    %c0_21 = arith.constant 0 : index
    %c0_22 = arith.constant 0 : index
    %c0_23 = arith.constant 0 : index
    %65 = vector.load %arg3[%c0_21, %c0_22, %c0_23] : memref<4x1x128xf32, #tpu.memory_space<vmem>>, vector<1x1x128xf32>
    %66 = vector.shape_cast %65 : vector<1x1x128xf32> to vector<1x128xf32>
    %67 = vector.extract_strided_slice %64 {offsets = [0, 0], sizes = [1, 128], strides = [1, 1]} : vector<8x128xf32> to vector<1x128xf32>
    %cst_24 = arith.constant 1.000000e+00 : f32
    %68 = vector.broadcast %cst_24 : f32 to vector<1x128xf32>
    %69 = arith.addf %67, %68 : vector<1x128xf32>
    %70 = arith.mulf %66, %69 : vector<1x128xf32>
    %cst_25 = arith.constant 5.000000e-01 : f32
    %71 = vector.broadcast %cst_25 : f32 to vector<1x128xf32>
    %72 = arith.mulf %70, %71 : vector<1x128xf32>
    %c0_26 = arith.constant 0 : index
    %c0_27 = arith.constant 0 : index
    %c0_28 = arith.constant 0 : index
    %73 = vector.load %arg4[%c0_26, %c0_27, %c0_28] : memref<4x1x128xf32, #tpu.memory_space<vmem>>, vector<1x1x128xf32>
    %74 = vector.shape_cast %73 : vector<1x1x128xf32> to vector<1x128xf32>
    %75 = vector.shape_cast %72 : vector<1x128xf32> to vector<1x1x128xf32>
    tpu.vector_store %arg4[%c0_26, %c0_27, %c0_28], %75 {strides = array<i32>} : memref<4x1x128xf32, #tpu.memory_space<vmem>>, vector<1x1x128xf32>,
    %76 = vector.extract_strided_slice %33 {offsets = [0, 0], sizes = [8, 128], strides = [1, 1]} : vector<16x128xf32> to vector<8x128xf32>
    %77 = vector.extract_strided_slice %33 {offsets = [8, 0], sizes = [8, 128], strides = [1, 1]} : vector<16x128xf32> to vector<8x128xf32>
    %78 = arith.mulf %76, %76 : vector<8x128xf32>
    %79 = arith.mulf %77, %77 : vector<8x128xf32>
    %80 = arith.addf %78, %79 : vector<8x128xf32>
    %cst_29 = arith.constant dense<0.000000e+00> : vector<8x128xf32>
    %81 = tpu.matmul %80, %58, %cst_29 {dimension_numbers = #tpu.dot_dimension_numbers<[1], [0], [0], [1], [0, 0, 1, 1], [], []>} : vector<8x128xf32>, vector<128x128xf32>, vector<8x128xf32> -> vector<8x128xf32>
    %c1_30 = arith.constant 1 : index
    %c0_31 = arith.constant 0 : index
    %c0_32 = arith.constant 0 : index
    %82 = vector.load %arg3[%c1_30, %c0_31, %c0_32] : memref<4x1x128xf32, #tpu.memory_space<vmem>>, vector<1x1x128xf32>
    %83 = vector.shape_cast %82 : vector<1x1x128xf32> to vector<1x128xf32>
    %84 = vector.extract_strided_slice %81 {offsets = [0, 0], sizes = [1, 128], strides = [1, 1]} : vector<8x128xf32> to vector<1x128xf32>
    %cst_33 = arith.constant 1.000000e+00 : f32
    %85 = vector.broadcast %cst_33 : f32 to vector<1x128xf32>
    %86 = arith.addf %84, %85 : vector<1x128xf32>
    %87 = arith.mulf %83, %86 : vector<1x128xf32>
    %cst_34 = arith.constant 5.000000e-01 : f32
    %88 = vector.broadcast %cst_34 : f32 to vector<1x128xf32>
    %89 = arith.mulf %87, %88 : vector<1x128xf32>
    %c1_35 = arith.constant 1 : index
    %c0_36 = arith.constant 0 : index
    %c0_37 = arith.constant 0 : index
    %90 = vector.load %arg4[%c1_35, %c0_36, %c0_37] : memref<4x1x128xf32, #tpu.memory_space<vmem>>, vector<1x1x128xf32>
    %91 = vector.shape_cast %90 : vector<1x1x128xf32> to vector<1x128xf32>
    %92 = vector.shape_cast %89 : vector<1x128xf32> to vector<1x1x128xf32>
    tpu.vector_store %arg4[%c1_35, %c0_36, %c0_37], %92 {strides = array<i32>} : memref<4x1x128xf32, #tpu.memory_space<vmem>>, vector<1x1x128xf32>,
    %93 = vector.extract_strided_slice %45 {offsets = [0, 0], sizes = [8, 128], strides = [1, 1]} : vector<16x128xf32> to vector<8x128xf32>
    %94 = vector.extract_strided_slice %45 {offsets = [8, 0], sizes = [8, 128], strides = [1, 1]} : vector<16x128xf32> to vector<8x128xf32>
    %95 = arith.mulf %93, %93 : vector<8x128xf32>
    %96 = arith.mulf %94, %94 : vector<8x128xf32>
    %97 = arith.addf %95, %96 : vector<8x128xf32>
    %cst_38 = arith.constant dense<0.000000e+00> : vector<8x128xf32>
    %98 = tpu.matmul %97, %58, %cst_38 {dimension_numbers = #tpu.dot_dimension_numbers<[1], [0], [0], [1], [0, 0, 1, 1], [], []>} : vector<8x128xf32>, vector<128x128xf32>, vector<8x128xf32> -> vector<8x128xf32>
    %c2_39 = arith.constant 2 : index
    %c0_40 = arith.constant 0 : index
    %c0_41 = arith.constant 0 : index
    %99 = vector.load %arg3[%c2_39, %c0_40, %c0_41] : memref<4x1x128xf32, #tpu.memory_space<vmem>>, vector<1x1x128xf32>
    %100 = vector.shape_cast %99 : vector<1x1x128xf32> to vector<1x128xf32>
    %101 = vector.extract_strided_slice %98 {offsets = [0, 0], sizes = [1, 128], strides = [1, 1]} : vector<8x128xf32> to vector<1x128xf32>
    %cst_42 = arith.constant 1.000000e+00 : f32
    %102 = vector.broadcast %cst_42 : f32 to vector<1x128xf32>
    %103 = arith.addf %101, %102 : vector<1x128xf32>
    %104 = arith.mulf %100, %103 : vector<1x128xf32>
    %cst_43 = arith.constant 5.000000e-01 : f32
    %105 = vector.broadcast %cst_43 : f32 to vector<1x128xf32>
    %106 = arith.mulf %104, %105 : vector<1x128xf32>
    %c2_44 = arith.constant 2 : index
    %c0_45 = arith.constant 0 : index
    %c0_46 = arith.constant 0 : index
    %107 = vector.load %arg4[%c2_44, %c0_45, %c0_46] : memref<4x1x128xf32, #tpu.memory_space<vmem>>, vector<1x1x128xf32>
    %108 = vector.shape_cast %107 : vector<1x1x128xf32> to vector<1x128xf32>
    %109 = vector.shape_cast %106 : vector<1x128xf32> to vector<1x1x128xf32>
    tpu.vector_store %arg4[%c2_44, %c0_45, %c0_46], %109 {strides = array<i32>} : memref<4x1x128xf32, #tpu.memory_space<vmem>>, vector<1x1x128xf32>,
    %110 = vector.extract_strided_slice %57 {offsets = [0, 0], sizes = [8, 128], strides = [1, 1]} : vector<16x128xf32> to vector<8x128xf32>
    %111 = vector.extract_strided_slice %57 {offsets = [8, 0], sizes = [8, 128], strides = [1, 1]} : vector<16x128xf32> to vector<8x128xf32>
    %112 = arith.mulf %110, %110 : vector<8x128xf32>
    %113 = arith.mulf %111, %111 : vector<8x128xf32>
    %114 = arith.addf %112, %113 : vector<8x128xf32>
    %cst_47 = arith.constant dense<0.000000e+00> : vector<8x128xf32>
    %115 = tpu.matmul %114, %58, %cst_47 {dimension_numbers = #tpu.dot_dimension_numbers<[1], [0], [0], [1], [0, 0, 1, 1], [], []>} : vector<8x128xf32>, vector<128x128xf32>, vector<8x128xf32> -> vector<8x128xf32>
    %c3_48 = arith.constant 3 : index
    %c0_49 = arith.constant 0 : index
    %c0_50 = arith.constant 0 : index
    %116 = vector.load %arg3[%c3_48, %c0_49, %c0_50] : memref<4x1x128xf32, #tpu.memory_space<vmem>>, vector<1x1x128xf32>
    %117 = vector.shape_cast %116 : vector<1x1x128xf32> to vector<1x128xf32>
    %118 = vector.extract_strided_slice %115 {offsets = [0, 0], sizes = [1, 128], strides = [1, 1]} : vector<8x128xf32> to vector<1x128xf32>
    %cst_51 = arith.constant 1.000000e+00 : f32
    %119 = vector.broadcast %cst_51 : f32 to vector<1x128xf32>
    %120 = arith.addf %118, %119 : vector<1x128xf32>
    %121 = arith.mulf %117, %120 : vector<1x128xf32>
    %cst_52 = arith.constant 5.000000e-01 : f32
    %122 = vector.broadcast %cst_52 : f32 to vector<1x128xf32>
    %123 = arith.mulf %121, %122 : vector<1x128xf32>
    %c3_53 = arith.constant 3 : index
    %c0_54 = arith.constant 0 : index
    %c0_55 = arith.constant 0 : index
    %124 = vector.load %arg4[%c3_53, %c0_54, %c0_55] : memref<4x1x128xf32, #tpu.memory_space<vmem>>, vector<1x1x128xf32>
    %125 = vector.shape_cast %124 : vector<1x1x128xf32> to vector<1x128xf32>
    %126 = vector.shape_cast %123 : vector<1x128xf32> to vector<1x1x128xf32>
    tpu.vector_store %arg4[%c3_53, %c0_54, %c0_55], %126 {strides = array<i32>} : memref<4x1x128xf32, #tpu.memory_space<vmem>>, vector<1x1x128xf32>,
    return
  }
  func.func @transform_0(%arg0: i32) -> (i32, i32, i32, i32) {
    %c0_i32 = arith.constant 0 : i32
    %c0_i32_0 = arith.constant 0 : i32
    %c0_i32_1 = arith.constant 0 : i32
    %c0_i32_2 = arith.constant 0 : i32
    return %arg0, %c0_i32, %c0_i32_0, %c0_i32_1 : i32, i32, i32, i32
  }
  func.func @transform_1(%arg0: i32) -> (i32, i32) {
    %c0_i32 = arith.constant 0 : i32
    %c0_i32_0 = arith.constant 0 : i32
    %c0_i32_1 = arith.constant 0 : i32
    return %c0_i32, %c0_i32_0 : i32, i32
  }
  func.func @transform_2(%arg0: i32) -> (i32, i32, i32) {
    %c0_i32 = arith.constant 0 : i32
    %c0_i32_0 = arith.constant 0 : i32
    %c0_i32_1 = arith.constant 0 : i32
    return %arg0, %c0_i32, %c0_i32_0 : i32, i32, i32
  }
  func.func @transform_3(%arg0: i32) -> (i32, i32, i32) {
    %c0_i32 = arith.constant 0 : i32
    %c0_i32_0 = arith.constant 0 : i32
    %c0_i32_1 = arith.constant 0 : i32
    return %arg0, %c0_i32, %c0_i32_0 : i32, i32, i32
  }
}

</mosaic_0001>

<bundles_post_ra>
// kernel: tpu_custom_call.1
= control target key start
LH: loop header
LB: loop body
LE: loop exit
PB: predicated region body
PF: predicated region fallthrough
CT: control target
= control target key end

     0   :  { %8 = vsyncpa [#allocation3], 0  ;;  %s2323_s0 = inlined_call_operand.hbm [shape: f32[8,1,128,256], index: 0, kind: input, shape index: {}]   ;;  %s2324_s1 = inlined_call_operand.hbm [shape: f32[128,128], index: 1, kind: input, shape index: {}]   ;;  %s2325_s2 = inlined_call_operand.hbm [shape: f32[8,1,128], index: 2, kind: input, shape index: {}]   ;;  %s2326_s3 = inlined_call_operand.hbm [shape: f32[8,1,128], index: 3, kind: output, shape index: {}]  }
   0x1   :  { %10 = vsyncpa [#allocation3 + $0x1], 0 }
   0x2   :  { %11 = vsyncpa [#allocation6], 0 }
   0x3   :  { %12 = vsyncpa [#allocation4], 0 }
   0x4   :  { %14 = vsyncpa [#allocation4 + $0x1], 0  ;;  %s1756_s12 = smov 0   ;;  %s1758_s13 = smov 0  }
   0x5   :  { %s1760_s14 = smov 0   ;;  %s1762_s15 = smov 0  }
   0x6 LB: > { %s1777_s16 = sadd.s32 1, %s1720_s15   ;;  %s27_s17 = sadd.s32 1, %s1716_s14  ;;  %s1720_s15 = sphi %s1762_s15, %s2352_s15   ;;  %s1716_s14 = sphi %s1760_s14, %s2351_s14   ;;  %s1712_s13 = sphi %s1758_s13, %s2350_s13   ;;  %s1708_s12 = sphi %s1756_s12, %s2349_s12  }
   0x7   : > { %s24_s18 = ssub.s32 %s1720_s15, %s1777_s16  ;;  %p34_p0 = scmp.ne.s32.totalorder %s1716_s14, %s1712_s13 }
   0x8   : > { %p25_p1 = scmp.eq.s32.totalorder %s24_s18, 0  ;;  %p35_p2 = scmp.eq.s32.totalorder %s1720_s15, 0 }
   0x9   : > { %p1520_p4 = scmp.lt.s32.totalorder %s1720_s15, 2  ;;  %s150_s20 = sand.u32 1, %s1720_s15  }
   0xa   : > { %s1788_s19 = scalar_select %p25_p1, %s1716_s14, %s27_s17  }
   0xb   : > { %p36_p5 = por %p35_p2, %p34_p0  ;;  %s152_s21 = sand.u32 1, %s1716_s14  }
   0xc   : > { %s1159_s22 = sshll.u32 %s152_s21, 10  ;;  %s1283_s23 = sshll.u32 %s1720_s15, 14 }
   0xd   : > { %s1801_s26 = scalar_lea.hbm %s2323_s0, %s1283_s23  ;;  %s154_s27 = scalar_lea.vmem [#allocation2], %s1159_s22 }
   0xe   : > { %s162_s28 = sshll.u32 %s154_s27, 4  ;;  %p1803_p6 = pnand %p1520_p4, %p36_p5  ;;  %s1807_s28 = int_to_ptr.vmem [resolvable:$true] %s162_s28 }
   0xf   : > { %s1809_s30 = scalar_lea.sflag [#allocation3], %s150_s20  ;;  %s1566_s4 = scalar_lea.hbm %s1801_s26, 16384 }
  0x10   : > { %p1567_p7 = scmp.ne.s32.totalorder %s1801_s26, %s1566_s4  ;;  %p2327_p8 = pneg %p1803_p6 }
  0x11   : > { %s1571_s7 = scalar_lea.hbm %s2323_s0, 32768  ;;  %p1572_p11 = scmp.lt.s32.totalorder %s1801_s26, %s2323_s0 }
  0x12   : > { %p1569_p9 = pnand %p2327_p8, %p1567_p7  ;;  %p1573_p12 = scmp.lt.s32.totalorder %s1571_s7, %s1566_s4 }
  0x14   : > { %p1570_p10 = pneg %p1569_p9  ;;  %p1574_p13 = por %p1573_p12, %p1572_p11 }
  0x16   : > { %p1575_p1 = pnand %p1574_p13, %p1570_p10 }
  0x18   : > { %1578 = shalt.err (!%p1575_p1)
}
  0x19   : > { %s1579_s10 = scalar_lea.vmem %s1807_s28, 16384  ;;  %s1722_s11 = smov [#allocation2]  }
  0x1a   : > { %p1580_p2 = scmp.ne.s32.totalorder %s1807_s28, %s1579_s10  ;;  %s1584_s17 = sshll.u32 %s1722_s11, 4  ;;  %s1585_s17 = int_to_ptr.vmem [resolvable:$false] %s1584_s17 }
  0x1b   : > { %s1586_s18 = scalar_lea.vmem %s1585_s17, 32768  ;;  %p1587_p7 = scmp.lt.s32.totalorder %s1807_s28, %s1585_s17 }
  0x1c   : > { %p1582_p4 = pnand %p1580_p2, %p2327_p8  ;;  %p1588_p9 = scmp.lt.s32.totalorder %s1586_s18, %s1579_s10 }
  0x1e   : > { %p1583_p5 = pneg %p1582_p4  ;;  %p1589_p3 = por %p1588_p9, %p1587_p7 }
  0x20   : > { %p1590_p11 = pnand %p1589_p3, %p1583_p5 }
  0x22   : > { %1593 = shalt.err (!%p1590_p11)
}
  0x23   : > { %s1723_s20 = smov 256   ;;  %s2329_s22 = smov 16  }
  0x24   : > { %1511 = dma.hbm_to_vmem [thread:$0]  (!%p1803_p6), %s1801_s26, 16384, %s1807_s28, %s1809_s30, %s1723_s20, %s1723_s20, %s2329_s22  }
  0x25   : > { %s1163_s23 = sshll.u32 %s152_s21, 2  ;;  %s1840_s24 = sadd.s32 4294967295, %s1720_s15  }
  0x26   : > { %s1155_s25 = sadd.s32 4294967294, %s1720_s15   ;;  %p40_p3 = scmp.ne.s32.totalorder %s1712_s13, %s1708_s12 }
  0x27   : > { %p2328_p10 = scmp.eq.s32.totalorder %s1840_s24, 0  ;;  %p111_p12 = scmp.eq.s32.totalorder %s1840_s24, 1 }
  0x28   : > { %p117_p13 = scmp.eq.s32.totalorder %s1155_s25, 1  ;;  %p1156_p1 = scmp.ge.s32.totalorder %s1720_s15, 1 }
  0x29   : > { %p1850_p2 = por %p2328_p10, %p40_p3  ;;  %p1857_p4 = por %p111_p12, %p34_p0 }
  0x2a   : > { %p1861_p5 = por %p117_p13, %p40_p3  ;;  %p124_p7 = scmp.lt.s32.totalorder %s1720_s15, 3 }
  0x2b   : > { %s2333_s27 = scalar_select %p1850_p2, 1, 0 }
  0x2c   : > { %s2334_s21 = scalar_select %p1857_p4, 1, 0 }
  0x2d   : > { %s2335_s26 = scalar_select %p1861_p5, 1, 0 }
  0x2e   : > { %p1866_p9 = pnand %p1156_p1, %p124_p7  ;;  %s1725_s4 = smov [#allocation5]  }
  0x2f   : > { %s136_s5 = sshll.u32 %s1725_s4, 4  ;;  %s176_s6 = scalar_lea.vmem [#allocation7], %s1163_s23  ;;  %s137_s5 = int_to_ptr.vmem [resolvable:$true] %s136_s5 }
  0x30   : > { %s183_s7 = sshll.u32 %s176_s6, 4  ;;  %p1504_p0 = pneg %p1866_p9  ;;  %s1879_s7 = int_to_ptr.vmem [resolvable:$true] %s183_s7 }
  0x31   : > { %s1284_s8 = sshll.u32 %s1720_s15, 6  ;;  %s1605_s18 = scalar_lea.vmem %s137_s5, 2048 }
  0x32   : > { %p1875_p11 = pnand %p1504_p0, %p2328_p10  ;;  %s1884_s17 = scalar_lea.hbm %s2325_s2, %s1284_s8 }
  0x33   : > { %p1606_p12 = scmp.ne.s32.totalorder %s137_s5, %s1605_s18  ;;  %p1613_p7 = scmp.lt.s32.totalorder %s137_s5, %s137_s5 }
  0x34   : > { %p1596_p3 = pneg %p1875_p11  ;;  %p1614_p8 = scmp.lt.s32.totalorder %s1605_s18, %s1605_s18 }
  0x36   : > { %p1608_p13 = pnand %p1606_p12, %p1596_p3  ;;  %p1615_p0 = por %p1614_p8, %p1613_p7 }
  0x38   : > { %p1609_p1 = pneg %p1608_p13 }
  0x3a   : > { %p1616_p10 = pnand %p1615_p0, %p1609_p1 }
  0x3c   : > { %1619 = shalt.err (!%p1616_p10)
}
  0x3d   : > { %s1726_s20 = smov 128   ;;  %s1727_s23 = smov 8  }
  0x3e   : > { %1507 = dma.hbm_to_vmem [thread:$0]  (!%p1875_p11), %s2324_s1, 2048, %s137_s5, [#allocation6], %s1726_s20, %s1726_s20, %s1727_s23  }
  0x3f   : > { %s1620_s6 = scalar_lea.hbm %s1884_s17, 64  ;;  %p2338_p12 = pneg %p1803_p6 }
  0x40   : > { %p1621_p3 = scmp.ne.s32.totalorder %s1884_s17, %s1620_s6  ;;  %s1625_s11 = scalar_lea.hbm %s2325_s2, 128 }
  0x41   : > { %p1626_p10 = scmp.lt.s32.totalorder %s1884_s17, %s2325_s2  ;;  %p1627_p1 = scmp.lt.s32.totalorder %s1625_s11, %s1620_s6 }
  0x42   : > { %p1623_p13 = pnand %p1621_p3, %p2338_p12 }
  0x43   : > { %p1628_p7 = por %p1627_p1, %p1626_p10 }
  0x44   : > { %p1624_p8 = pneg %p1623_p13 }
  0x46   : > { %p1629_p0 = pnand %p1628_p7, %p1624_p8 }
  0x48   : > { %1632 = shalt.err (!%p1629_p0)
}
  0x49   : > { %s1633_s5 = scalar_lea.vmem %s1879_s7, 64  ;;  %p2339_p3 = pmov %p2338_p12 }
  0x4a   : > { %p1634_p11 = scmp.ne.s32.totalorder %s1879_s7, %s1633_s5  ;;  %s1728_s9 = smov [#allocation7]  }
  0x4b   : > { %s1638_s20 = sshll.u32 %s1728_s9, 4  ;;  %s1639_s20 = int_to_ptr.vmem [resolvable:$false] %s1638_s20 }
  0x4c   : > { %p1636_p12 = pnand %p1634_p11, %p2339_p3  ;;  %s1640_s23 = scalar_lea.vmem %s1639_s20, 128 }
  0x4d   : > { %p1641_p5 = scmp.lt.s32.totalorder %s1879_s7, %s1639_s20  ;;  %p1642_p4 = scmp.lt.s32.totalorder %s1640_s23, %s1633_s5 }
  0x4e   : > { %p1637_p13 = pneg %p1636_p12 }
  0x4f   : > { %p1643_p2 = por %p1642_p4, %p1641_p5 }
  0x51   : > { %p1644_p10 = pnand %p1643_p2, %p1637_p13 }
  0x53   : > { %1647 = shalt.err (!%p1644_p10)
}
  0x54   : > { %s1729_s22 = smov 1   ;;  %s2340_s25 = smov 16  }
  0x55   : > { %1514 = dma.hbm_to_vmem [thread:$0]  (!%p1803_p6), %s1884_s17, 64, %s1879_s7, %s1809_s30, %s2340_s25, %s2340_s25, %s1729_s22  }
  0x56   : > { %195 = sbr.rel (%p1866_p9) target bundleno = 586 (0x24a), region = 32  ;;  %s197_s4 = sand.u32 (!%p1866_p9), 1, %s1840_s24  }
  0x57   : > { %s1922_s6 = sand.u32 (!%p1866_p9), 1, %s1712_s13   ;;  %s198_s10 = scalar_lea.sflag (!%p1866_p9), [#allocation3], %s197_s4 }
  0x58   : > { %s1167_s8 = sshll.u32 (!%p1866_p9), %s1922_s6, 10  ;;  %p2341_p2 = scmp.ne.s32.totalorder (!%p1866_p9), %s2333_s27, 0 }
  0x59   : > { %s1925_s11 = scalar_lea.vmem (!%p1866_p9), [#allocation2], %s1167_s8 }
  0x5b   : > { %1691 = dma.done.wait (%p2341_p2), %s198_s10, 16384  }
  0x5c   : > { %1693 = vsyncadd (%p2341_p2), %s198_s10, 4294950912  ;;  %p2342_p6 = scmp.eq.s32.totalorder %s1840_s24, 0 }
  0x5e   : > { %1695 = dma.done.wait (%p2342_p6), [#allocation6], 2048   ;;  %p2343_p4 = pmov %p2342_p6 }
  0x5f   : > { %s1169_s29 = sshll.u32 %s1922_s6, 2 }
  0x60   : > { %1697 = vsyncadd (%p2343_p4), [#allocation6], 4294965248  ;;  %s1938_s30 = scalar_lea.vmem [#allocation7], %s1169_s29 }
  0x61   : > { %1699 = dma.done.wait (%p2341_p2), %s198_s10, 64  }
  0x62   : > { %1701 = vsyncadd (%p2341_p2), %s198_s10, 4294967232  ;;  %v1730_v0 = vmov 0.0   ;;  %v288_v1 = vld [vmem:[%s1925_s11 + $0xf8] sm:$0xff]  ;;  %v287_v3 = vld [vmem:[%s1925_s11 + $0xf0] sm:$0xff]  ;;  %v245_v45 = vlaneseq  ;;  %vm1732_vm3 = vmmov 0   ;;  %s241_s27 = scalar_lea.vmem [#allocation8], %s1169_s29 }
  0x63   : > { %353 = vmatprep.mubr.f32.mxu0 %v1730_v0  ;;  %465 = vmatprep.mubr.f32.mxu1 %v1730_v0  ;;  %v1203_v2 = vld [vmem:[%s1925_s11 + $0x1f8] sm:$0xff]  ;;  %v1202_v4 = vld [vmem:[%s1925_s11 + $0x1f0] sm:$0xff]  ;;  %v286_v5 = vld [vmem:[%s1925_s11 + $0xe8] sm:$0xff]  ;;  %s1052_s28 = sshll.u32 %s241_s27, 4  ;;  %s1285_s7 = sshll.u32 %s1840_s24, 6  ;;  %s2275_s28 = int_to_ptr.vmem [resolvable:$true] %s1052_s28 }
  0x64   : > { %289 = vmatprep.subr.mxu0 %v288_v1  ;;  %401 = vmatprep.subr.mxu1 %v1203_v2  ;;  %v1201_v6 = vld [vmem:[%s1925_s11 + $0x1e8] sm:$0xff]  ;;  %v285_v7 = vld [vmem:[%s1925_s11 + $0xe0] sm:$0xff]  ;;  %v284_v9 = vld [vmem:[%s1925_s11 + $0xd8] sm:$0xff]  ;;  %v246_v54 = vshrl.u32 %v245_v45, 7  ;;  %v249_v55 = vand.u32 127, %v245_v45  ;;  %s2280_s5 = scalar_lea.hbm %s2326_s3, %s1285_s7  ;;  %s1039_s9 = scalar_lea.sflag [#allocation4], %s1922_s6 }
  0x65   : > { %290 = vmatpush1.msra.mxu0 %v287_v3  ;;  %402 = vmatpush1.msra.mxu1 %v1202_v4  ;;  %v1200_v8 = vld [vmem:[%s1925_s11 + $0x1e0] sm:$0xff]  ;;  %v1199_v10 = vld [vmem:[%s1925_s11 + $0x1d8] sm:$0xff]  ;;  %v283_v11 = vld [vmem:[%s1925_s11 + $0xd0] sm:$0xff]  ;;  %s1648_s24 = scalar_lea.vmem %s2275_s28, 64  ;;  %p2346_p9 = scmp.ne.s32.totalorder %s2334_s21, 0 }
  0x66   : > { %291 = vmatprep.subr.mxu0 %v286_v5  ;;  %403 = vmatprep.subr.mxu1 %v1201_v6  ;;  %v1198_v12 = vld [vmem:[%s1925_s11 + $0x1d0] sm:$0xff]  ;;  %v282_v13 = vld [vmem:[%s1925_s11 + $0xc8] sm:$0xff]  ;;  %v281_v15 = vld [vmem:[%s1925_s11 + $0xc0] sm:$0xff]  ;;  %vm250_vm0 = vcmp.eq.s32.totalorder %v246_v54, 0  ;;  %vm252_vm1 = vcmp.eq.s32.totalorder %v249_v55, 0  ;;  %p1649_p5 = scmp.ne.s32.totalorder %s2275_s28, %s1648_s24  ;;  %s1733_s20 = smov [#allocation8]  }
  0x67   : > { %292 = vmatpush1.msra.mxu0 %v285_v7  ;;  %404 = vmatpush1.msra.mxu1 %v1200_v8  ;;  %v1197_v14 = vld [vmem:[%s1925_s11 + $0x1c8] sm:$0xff]  ;;  %v1196_v16 = vld [vmem:[%s1925_s11 + $0x1c0] sm:$0xff]  ;;  %v280_v17 = vld [vmem:[%s1925_s11 + $0xb8] sm:$0xff]  ;;  %s1652_s23 = sshll.u32 %s1733_s20, 4  ;;  %s1653_s23 = int_to_ptr.vmem [resolvable:$false] %s1652_s23 }
  0x68   : > { %293 = vmatprep.subr.mxu0 %v284_v9  ;;  %405 = vmatprep.subr.mxu1 %v1199_v10  ;;  %v1195_v18 = vld [vmem:[%s1925_s11 + $0x1b8] sm:$0xff]  ;;  %v279_v19 = vld [vmem:[%s1925_s11 + $0xb0] sm:$0xff]  ;;  %v278_v21 = vld [vmem:[%s1925_s11 + $0xa8] sm:$0xff]  ;;  %v1731_v10 = vmov 1.0   ;;  %p1650_p8 = pnand %p1649_p5, %p2346_p9  ;;  %s1654_s22 = scalar_lea.vmem %s1653_s23, 128 }
  0x69   : > { %294 = vmatpush1.msra.mxu0 %v283_v11  ;;  %406 = vmatpush1.msra.mxu1 %v1198_v12  ;;  %v1194_v20 = vld [vmem:[%s1925_s11 + $0x1b0] sm:$0xff]  ;;  %v1193_v22 = vld [vmem:[%s1925_s11 + $0x1a8] sm:$0xff]  ;;  %v277_v23 = vld [vmem:[%s1925_s11 + $0xa0] sm:$0xff]  ;;  %p1655_p7 = scmp.lt.s32.totalorder %s2275_s28, %s1653_s23  ;;  %p1656_p0 = scmp.lt.s32.totalorder %s1654_s22, %s1648_s24 }
  0x6a   : > { %295 = vmatprep.subr.mxu0 %v282_v13  ;;  %407 = vmatprep.subr.mxu1 %v1197_v14  ;;  %v1192_v24 = vld [vmem:[%s1925_s11 + $0x1a0] sm:$0xff]  ;;  %v276_v25 = vld [vmem:[%s1925_s11 + $0x98] sm:$0xff]  ;;  %v275_v27 = vld [vmem:[%s1925_s11 + $0x90] sm:$0xff]  ;;  %p1651_p1 = pneg %p1650_p8 }
  0x6b   : > { %296 = vmatpush1.msra.mxu0 %v281_v15  ;;  %408 = vmatpush1.msra.mxu1 %v1196_v16  ;;  %v1191_v26 = vld [vmem:[%s1925_s11 + $0x198] sm:$0xff]  ;;  %v1190_v28 = vld [vmem:[%s1925_s11 + $0x190] sm:$0xff]  ;;  %v274_v29 = vld [vmem:[%s1925_s11 + $0x88] sm:$0xff]  ;;  %p1657_p11 = por %p1656_p0, %p1655_p7 }
  0x6c   : > { %297 = vmatprep.subr.mxu0 %v280_v17  ;;  %409 = vmatprep.subr.mxu1 %v1195_v18  ;;  %v1189_v30 = vld [vmem:[%s1925_s11 + $0x188] sm:$0xff]  ;;  %v273_v31 = vld [vmem:[%s1925_s11 + $0x80] sm:$0xff]  ;;  %v272_v33 = vld [vmem:[%s1925_s11 + $0x78] sm:$0xff] }
  0x6d   : > { %298 = vmatpush1.msra.mxu0 %v279_v19  ;;  %410 = vmatpush1.msra.mxu1 %v1194_v20  ;;  %v1188_v32 = vld [vmem:[%s1925_s11 + $0x180] sm:$0xff]  ;;  %v1187_v34 = vld [vmem:[%s1925_s11 + $0x178] sm:$0xff]  ;;  %v271_v35 = vld [vmem:[%s1925_s11 + $0x70] sm:$0xff]  ;;  %p1658_p3 = pnand %p1657_p11, %p1651_p1 }
  0x6e   : > { %299 = vmatprep.subr.mxu0 %v278_v21  ;;  %411 = vmatprep.subr.mxu1 %v1193_v22  ;;  %v1186_v36 = vld [vmem:[%s1925_s11 + $0x170] sm:$0xff]  ;;  %v270_v37 = vld [vmem:[%s1925_s11 + $0x68] sm:$0xff]  ;;  %v269_v39 = vld [vmem:[%s1925_s11 + $0x60] sm:$0xff] }
  0x6f   : > { %300 = vmatpush1.msra.mxu0 %v277_v23  ;;  %412 = vmatpush1.msra.mxu1 %v1192_v24  ;;  %v1185_v38 = vld [vmem:[%s1925_s11 + $0x168] sm:$0xff]  ;;  %v1184_v40 = vld [vmem:[%s1925_s11 + $0x160] sm:$0xff]  ;;  %v268_v41 = vld [vmem:[%s1925_s11 + $0x58] sm:$0xff] }
  0x70   : > { %301 = vmatprep.subr.mxu0 %v276_v25  ;;  %413 = vmatprep.subr.mxu1 %v1191_v26  ;;  %v1183_v42 = vld [vmem:[%s1925_s11 + $0x158] sm:$0xff]  ;;  %v267_v43 = vld [vmem:[%s1925_s11 + $0x50] sm:$0xff]  ;;  %v266_v46 = vld [vmem:[%s1925_s11 + $0x48] sm:$0xff] }
  0x71   : > { %302 = vmatpush1.msra.mxu0 %v275_v27  ;;  %414 = vmatpush1.msra.mxu1 %v1190_v28  ;;  %v1182_v44 = vld [vmem:[%s1925_s11 + $0x150] sm:$0xff]  ;;  %v1181_v47 = vld [vmem:[%s1925_s11 + $0x148] sm:$0xff]  ;;  %v265_v48 = vld [vmem:[%s1925_s11 + $0x40] sm:$0xff] }
  0x72   : > { %303 = vmatprep.subr.mxu0 %v274_v29  ;;  %415 = vmatprep.subr.mxu1 %v1189_v30  ;;  %v1180_v49 = vld [vmem:[%s1925_s11 + $0x140] sm:$0xff]  ;;  %v264_v50 = vld [vmem:[%s1925_s11 + $0x38] sm:$0xff]  ;;  %v263_v52 = vld [vmem:[%s1925_s11 + $0x30] sm:$0xff] }
  0x73   : > { %304 = vmatpush1.msra.mxu0 %v273_v31  ;;  %416 = vmatpush1.msra.mxu1 %v1188_v32  ;;  %v1179_v51 = vld [vmem:[%s1925_s11 + $0x138] sm:$0xff]  ;;  %v1178_v53 = vld [vmem:[%s1925_s11 + $0x130] sm:$0xff]  ;;  %v262_v56 = vld [vmem:[%s1925_s11 + $0x28] sm:$0xff] }
  0x74   : > { %305 = vmatprep.subr.mxu0 %v272_v33  ;;  %417 = vmatprep.subr.mxu1 %v1187_v34  ;;  %v1177_v57 = vld [vmem:[%s1925_s11 + $0x128] sm:$0xff]  ;;  %v261_v58 = vld [vmem:[%s1925_s11 + $0x20] sm:$0xff]  ;;  %v260_v60 = vld [vmem:[%s1925_s11 + $0x18] sm:$0xff] }
  0x75   : > { %306 = vmatpush1.msra.mxu0 %v271_v35  ;;  %418 = vmatpush1.msra.mxu1 %v1186_v36  ;;  %v1176_v59 = vld [vmem:[%s1925_s11 + $0x120] sm:$0xff]  ;;  %v1175_v61 = vld [vmem:[%s1925_s11 + $0x118] sm:$0xff]  ;;  %v259_v62 = vld [vmem:[%s1925_s11 + $0x10] sm:$0xff] }
  0x76   : > { %307 = vmatprep.subr.mxu0 %v270_v37  ;;  %419 = vmatprep.subr.mxu1 %v1185_v38  ;;  %v1174_v63 = vld [vmem:[%s1925_s11 + $0x110] sm:$0xff]  ;;  %v258_v1 = vld [vmem:[%s1925_s11 + $0x8] sm:$0xff]  ;;  %v257_v3 = vld [vmem:[%s1925_s11] sm:$0xff] }
  0x77   : > { %308 = vmatpush1.msra.mxu0 %v269_v39  ;;  %420 = vmatpush1.msra.mxu1 %v1184_v40  ;;  %v1173_v2 = vld [vmem:[%s1925_s11 + $0x108] sm:$0xff]  ;;  %v1172_v4 = vld [vmem:[%s1925_s11 + $0x100] sm:$0xff]  ;;  %vm2010_vm2 = vmand %vm250_vm0, %vm252_vm1 }
  0x78   : > { %309 = vmatprep.subr.mxu0 %v268_v41  ;;  %421 = vmatprep.subr.mxu1 %v1183_v42  ;;  %v1236_v6 = vld [vmem:[%s1925_s11 + $0x2f8] sm:$0xff]  ;;  %v1235_v8 = vld [vmem:[%s1925_s11 + $0x2f0] sm:$0xff]  ;;  %v1234_v11 = vld [vmem:[%s1925_s11 + $0x2e8] sm:$0xff] }
  0x79   : > { %310 = vmatpush1.msra.mxu0 %v267_v43  ;;  %422 = vmatpush1.msra.mxu1 %v1182_v44  ;;  %v1269_v7 = vld [vmem:[%s1925_s11 + $0x3f8] sm:$0xff]  ;;  %v1268_v9 = vld [vmem:[%s1925_s11 + $0x3f0] sm:$0xff]  ;;  %v1267_v12 = vld [vmem:[%s1925_s11 + $0x3e8] sm:$0xff] }
  0x7a   : > { %311 = vmatprep.subr.mxu0 %v266_v46  ;;  %423 = vmatprep.subr.mxu1 %v1181_v47  ;;  %v1233_v13 = vld [vmem:[%s1925_s11 + $0x2e0] sm:$0xff]  ;;  %v1232_v15 = vld [vmem:[%s1925_s11 + $0x2d8] sm:$0xff]  ;;  %v1231_v17 = vld [vmem:[%s1925_s11 + $0x2d0] sm:$0xff] }
  0x7b   : > { %312 = vmatpush1.msra.mxu0 %v265_v48  ;;  %424 = vmatpush1.msra.mxu1 %v1180_v49  ;;  %v1266_v14 = vld [vmem:[%s1925_s11 + $0x3e0] sm:$0xff]  ;;  %v1265_v16 = vld [vmem:[%s1925_s11 + $0x3d8] sm:$0xff]  ;;  %v1264_v18 = vld [vmem:[%s1925_s11 + $0x3d0] sm:$0xff] }
  0x7c   : > { %313 = vmatprep.subr.mxu0 %v264_v50  ;;  %425 = vmatprep.subr.mxu1 %v1179_v51  ;;  %v1230_v19 = vld [vmem:[%s1925_s11 + $0x2c8] sm:$0xff]  ;;  %v1229_v21 = vld [vmem:[%s1925_s11 + $0x2c0] sm:$0xff]  ;;  %v1228_v23 = vld [vmem:[%s1925_s11 + $0x2b8] sm:$0xff] }
  0x7d   : > { %314 = vmatpush1.msra.mxu0 %v263_v52  ;;  %426 = vmatpush1.msra.mxu1 %v1178_v53  ;;  %v1263_v20 = vld [vmem:[%s1925_s11 + $0x3c8] sm:$0xff]  ;;  %v1262_v22 = vld [vmem:[%s1925_s11 + $0x3c0] sm:$0xff]  ;;  %v1261_v24 = vld [vmem:[%s1925_s11 + $0x3b8] sm:$0xff] }
  0x7e   : > { %315 = vmatprep.subr.mxu0 %v262_v56  ;;  %427 = vmatprep.subr.mxu1 %v1177_v57  ;;  %v1227_v25 = vld [vmem:[%s1925_s11 + $0x2b0] sm:$0xff]  ;;  %v1226_v27 = vld [vmem:[%s1925_s11 + $0x2a8] sm:$0xff]  ;;  %v1225_v29 = vld [vmem:[%s1925_s11 + $0x2a0] sm:$0xff] }
  0x7f   : > { %316 = vmatpush1.msra.mxu0 %v261_v58  ;;  %428 = vmatpush1.msra.mxu1 %v1176_v59  ;;  %v1260_v26 = vld [vmem:[%s1925_s11 + $0x3b0] sm:$0xff]  ;;  %v1259_v28 = vld [vmem:[%s1925_s11 + $0x3a8] sm:$0xff]  ;;  %v1258_v30 = vld [vmem:[%s1925_s11 + $0x3a0] sm:$0xff] }
  0x80   : > { %317 = vmatprep.subr.mxu0 %v260_v60  ;;  %429 = vmatprep.subr.mxu1 %v1175_v61  ;;  %v1224_v31 = vld [vmem:[%s1925_s11 + $0x298] sm:$0xff]  ;;  %v1223_v33 = vld [vmem:[%s1925_s11 + $0x290] sm:$0xff]  ;;  %v1222_v35 = vld [vmem:[%s1925_s11 + $0x288] sm:$0xff] }
  0x81   : > { %318 = vmatpush1.msra.mxu0 %v259_v62  ;;  %430 = vmatpush1.msra.mxu1 %v1174_v63  ;;  %v1257_v32 = vld [vmem:[%s1925_s11 + $0x398] sm:$0xff]  ;;  %v1256_v34 = vld [vmem:[%s1925_s11 + $0x390] sm:$0xff]  ;;  %v1255_v36 = vld [vmem:[%s1925_s11 + $0x388] sm:$0xff] }
  0x82   : > { %319 = vmatprep.subr.mxu0 %v258_v1  ;;  %431 = vmatprep.subr.mxu1 %v1173_v2  ;;  %v1221_v37 = vld [vmem:[%s1925_s11 + $0x280] sm:$0xff]  ;;  %v1220_v39 = vld [vmem:[%s1925_s11 + $0x278] sm:$0xff]  ;;  %v1219_v41 = vld [vmem:[%s1925_s11 + $0x270] sm:$0xff] }
  0x83   : > { %320 = vmatpush1.msra.mxu0 %v257_v3  ;;  %432 = vmatpush1.msra.mxu1 %v1172_v4  ;;  %v1254_v38 = vld [vmem:[%s1925_s11 + $0x380] sm:$0xff]  ;;  %v1253_v40 = vld [vmem:[%s1925_s11 + $0x378] sm:$0xff]  ;;  %v1252_v42 = vld [vmem:[%s1925_s11 + $0x370] sm:$0xff] }
  0x84   : > { %1171 = vmatmul.mubr.msk.f32.vlgmr.msra.gmra.mxu0 %vm2010_vm2, %v1731_v10  ;;  %1204 = vmatmul.mubr.msk.f32.vlgmr.msra.gmra.mxu1 %vm2010_vm2, %v1731_v10  ;;  %v1218_v43 = vld [vmem:[%s1925_s11 + $0x268] sm:$0xff]  ;;  %v1217_v45 = vld [vmem:[%s1925_s11 + $0x260] sm:$0xff]  ;;  %v1216_v47 = vld [vmem:[%s1925_s11 + $0x258] sm:$0xff] }
  0x85   : > { %513 = vmatprep.subr.mxu0 %v1236_v6  ;;  %625 = vmatprep.subr.mxu1 %v1269_v7  ;;  %v1251_v44 = vld [vmem:[%s1925_s11 + $0x368] sm:$0xff]  ;;  %v1250_v46 = vld [vmem:[%s1925_s11 + $0x360] sm:$0xff]  ;;  %v1249_v48 = vld [vmem:[%s1925_s11 + $0x358] sm:$0xff] }
  0x86   : > { %514 = vmatpush1.msra.mxu0 %v1235_v8  ;;  %626 = vmatpush1.msra.mxu1 %v1268_v9  ;;  %v1215_v49 = vld [vmem:[%s1925_s11 + $0x250] sm:$0xff]  ;;  %v1214_v51 = vld [vmem:[%s1925_s11 + $0x248] sm:$0xff]  ;;  %v1213_v53 = vld [vmem:[%s1925_s11 + $0x240] sm:$0xff] }
  0x87   : > { %515 = vmatprep.subr.mxu0 %v1234_v11  ;;  %627 = vmatprep.subr.mxu1 %v1267_v12  ;;  %v1248_v50 = vld [vmem:[%s1925_s11 + $0x350] sm:$0xff]  ;;  %v1247_v52 = vld [vmem:[%s1925_s11 + $0x348] sm:$0xff]  ;;  %v1246_v54 = vld [vmem:[%s1925_s11 + $0x340] sm:$0xff] }
  0x88   : > { %359 = vmatprep.mubr.f32.mxu0 %v1730_v0  ;;  %471 = vmatprep.mubr.f32.mxu1 %v1730_v0  ;;  %v1212_v55 = vld [vmem:[%s1925_s11 + $0x238] sm:$0xff]  ;;  %v1211_v57 = vld [vmem:[%s1925_s11 + $0x230] sm:$0xff]  ;;  %v1210_v59 = vld [vmem:[%s1925_s11 + $0x228] sm:$0xff] }
  0x89   : > { %516 = vmatpush1.msra.mxu0 %v1233_v13  ;;  %628 = vmatpush1.msra.mxu1 %v1266_v14  ;;  %v1245_v56 = vld [vmem:[%s1925_s11 + $0x338] sm:$0xff]  ;;  %v1244_v58 = vld [vmem:[%s1925_s11 + $0x330] sm:$0xff]  ;;  %v1243_v60 = vld [vmem:[%s1925_s11 + $0x328] sm:$0xff] }
  0x8a   : > { %360 = vmatmul.mubr.f32.gmra.mxu0 %v1730_v0  ;;  %472 = vmatmul.mubr.f32.gmra.mxu1 %v1730_v0  ;;  %v1209_v61 = vld [vmem:[%s1925_s11 + $0x220] sm:$0xff]  ;;  %v1208_v63 = vld [vmem:[%s1925_s11 + $0x218] sm:$0xff]  ;;  %v1207_v2 = vld [vmem:[%s1925_s11 + $0x210] sm:$0xff] }
  0x8b   : > { %517 = vmatprep.subr.mxu0 %v1232_v15  ;;  %629 = vmatprep.subr.mxu1 %v1265_v16  ;;  %v1242_v62 = vld [vmem:[%s1925_s11 + $0x320] sm:$0xff]  ;;  %v1241_v1 = vld [vmem:[%s1925_s11 + $0x318] sm:$0xff]  ;;  %v1240_v3 = vld [vmem:[%s1925_s11 + $0x310] sm:$0xff] }
  0x8c   : > { %518 = vmatpush1.msra.mxu0 %v1231_v17  ;;  %630 = vmatpush1.msra.mxu1 %v1264_v18  ;;  %v1206_v4 = vld [vmem:[%s1925_s11 + $0x208] sm:$0xff]  ;;  %v1205_v7 = vld [vmem:[%s1925_s11 + $0x200] sm:$0xff]  ;;  %v2096_v9 = vld [vmem:[#allocation5 + $0x78] sm:$0xff] }
  0x8d   : > { %519 = vmatprep.subr.mxu0 %v1230_v19  ;;  %631 = vmatprep.subr.mxu1 %v1263_v20  ;;  %v1239_v6 = vld [vmem:[%s1925_s11 + $0x308] sm:$0xff]  ;;  %v1238_v8 = vld [vmem:[%s1925_s11 + $0x300] sm:$0xff]  ;;  %v2104_v11 = vld [vmem:[#allocation5 + $0x70] sm:$0xff] }
  0x8e   : > { %520 = vmatpush1.msra.mxu0 %v1229_v21  ;;  %632 = vmatpush1.msra.mxu1 %v1262_v22  ;;  %v2110_v5 = vld [vmem:[#allocation5 + $0x68] sm:$0xff]  ;;  %v2122_v12 = vld [vmem:[#allocation5 + $0x58] sm:$0xff]  ;;  %v2128_v13 = vld [vmem:[#allocation5 + $0x50] sm:$0xff] }
  0x8f   : > { %521 = vmatprep.subr.mxu0 %v1228_v23  ;;  %633 = vmatprep.subr.mxu1 %v1261_v24  ;;  %v2134_v14 = vld [vmem:[#allocation5 + $0x48] sm:$0xff]  ;;  %v2140_v15 = vld [vmem:[#allocation5 + $0x40] sm:$0xff]  ;;  %v2146_v16 = vld [vmem:[#allocation5 + $0x38] sm:$0xff] }
  0x90   : > { %522 = vmatpush1.msra.mxu0 %v1227_v25  ;;  %634 = vmatpush1.msra.mxu1 %v1260_v26  ;;  %v2156_v17 = vld [vmem:[#allocation5 + $0x30] sm:$0xff]  ;;  %v2162_v18 = vld [vmem:[#allocation5 + $0x28] sm:$0xff]  ;;  %v2168_v19 = vld [vmem:[#allocation5 + $0x20] sm:$0xff] }
  0x91   : > { %523 = vmatprep.subr.mxu0 %v1226_v27  ;;  %635 = vmatprep.subr.mxu1 %v1259_v28  ;;  %v2174_v20 = vld [vmem:[#allocation5 + $0x18] sm:$0xff]  ;;  %v2180_v21 = vld [vmem:[#allocation5 + $0x10] sm:$0xff]  ;;  %v2186_v22 = vld [vmem:[#allocation5 + $0x8] sm:$0xff] }
  0x92   : > { %524 = vmatpush1.msra.mxu0 %v1225_v29  ;;  %636 = vmatpush1.msra.mxu1 %v1258_v30  ;;  %v2188_v23 = vld [vmem:[#allocation5] sm:$0xff] }
  0x93   : > { %525 = vmatprep.subr.mxu0 %v1224_v31  ;;  %637 = vmatprep.subr.mxu1 %v1257_v32 }
  0x94   : > { %526 = vmatpush1.msra.mxu0 %v1223_v33  ;;  %638 = vmatpush1.msra.mxu1 %v1256_v34 }
  0x95   : > { %527 = vmatprep.subr.mxu0 %v1222_v35  ;;  %639 = vmatprep.subr.mxu1 %v1255_v36 }
  0x96   : > { %528 = vmatpush1.msra.mxu0 %v1221_v37  ;;  %640 = vmatpush1.msra.mxu1 %v1254_v38 }
  0x97   : > { %529 = vmatprep.subr.mxu0 %v1220_v39  ;;  %641 = vmatprep.subr.mxu1 %v1253_v40 }
  0x98   : > { %530 = vmatpush1.msra.mxu0 %v1219_v41  ;;  %642 = vmatpush1.msra.mxu1 %v1252_v42 }
  0x99   : > { %531 = vmatprep.subr.mxu0 %v1218_v43  ;;  %643 = vmatprep.subr.mxu1 %v1251_v44 }
  0x9a   : > { %532 = vmatpush1.msra.mxu0 %v1217_v45  ;;  %644 = vmatpush1.msra.mxu1 %v1250_v46 }
  0x9b   : > { %533 = vmatprep.subr.mxu0 %v1216_v47  ;;  %645 = vmatprep.subr.mxu1 %v1249_v48 }
  0x9c   : > { %534 = vmatpush1.msra.mxu0 %v1215_v49  ;;  %646 = vmatpush1.msra.mxu1 %v1248_v50 }
  0x9d   : > { %535 = vmatprep.subr.mxu0 %v1214_v51  ;;  %647 = vmatprep.subr.mxu1 %v1247_v52 }
  0x9e   : > { %536 = vmatpush1.msra.mxu0 %v1213_v53  ;;  %648 = vmatpush1.msra.mxu1 %v1246_v54 }
  0x9f   : > { %537 = vmatprep.subr.mxu0 %v1212_v55  ;;  %649 = vmatprep.subr.mxu1 %v1245_v56 }
  0xa0   : > { %538 = vmatpush1.msra.mxu0 %v1211_v57  ;;  %650 = vmatpush1.msra.mxu1 %v1244_v58 }
  0xa1   : > { %539 = vmatprep.subr.mxu0 %v1210_v59  ;;  %651 = vmatprep.subr.mxu1 %v1243_v60 }
  0xa2   : > { %540 = vmatpush1.msra.mxu0 %v1209_v61  ;;  %652 = vmatpush1.msra.mxu1 %v1242_v62  ;;  %v793_v61 = vld [vmem:[%s1938_s30] sm:$0x1] }
  0xa3   : > { %541 = vmatprep.subr.mxu0 %v1208_v63  ;;  %653 = vmatprep.subr.mxu1 %v1241_v1  ;;  %v1271_v63 = vld [vmem:[%s1938_s30 + $0x1] sm:$0x1] }
  0xa4   : > { %542 = vmatpush1.msra.mxu0 %v1207_v2  ;;  %654 = vmatpush1.msra.mxu1 %v1240_v3 }
  0xa5   : > { %543 = vmatprep.subr.mxu0 %v1206_v4  ;;  %655 = vmatprep.subr.mxu1 %v1239_v6 }
  0xa6   : > { %544 = vmatpush1.msra.mxu0 %v1205_v7  ;;  %577 = vmatprep.mubr.f32.mxu0 %v1730_v0 }
  0xa7   : > { %656 = vmatpush1.msra.mxu1 %v1238_v8  ;;  %689 = vmatprep.mubr.f32.mxu1 %v1730_v0 }
  0xa8   : > { %1237 = vmatmul.mubr.msk.f32.vlgmr.msra.gmra.mxu0 %vm2010_vm2, %v1731_v10  ;;  %1270 = vmatmul.mubr.msk.f32.vlgmr.msra.gmra.mxu1 %vm2010_vm2, %v1731_v10  ;;  %v2116_v10 = vld [vmem:[#allocation5 + $0x60] sm:$0xff] }
  0xa9   : > { %583 = vmatprep.mubr.f32.mxu0 %v1730_v0  ;;  %695 = vmatprep.mubr.f32.mxu1 %v1730_v0 }
  0xaa   : > { %1354 = vmatprep.subr.mxu0 %v1730_v0  ;;  %1389 = vmatprep.subr.mxu1 %v1730_v0 }
  0xab   : > { %1355 = vmatpush3.msra.mxu0 %v2096_v9  ;;  %1390 = vmatpush3.msra.mxu1 %v2096_v9 }
  0xac   : > { %584 = vmatmul.mubr.f32.gmra.mxu0 %v1730_v0  ;;  %696 = vmatmul.mubr.f32.gmra.mxu1 %v1730_v0 }
  0xad   : > { %1356 = vmatprep.subr.mxu0 %v1730_v0  ;;  %1391 = vmatprep.subr.mxu1 %v1730_v0 }
  0xae   : > { %1357 = vmatpush3.msra.mxu0 %v2104_v11  ;;  %1392 = vmatpush3.msra.mxu1 %v2104_v11 }
  0xaf   : > { %1358 = vmatprep.subr.mxu0 %v1730_v0  ;;  %1393 = vmatprep.subr.mxu1 %v1730_v0 }
  0xb0   : > { %1359 = vmatpush3.msra.mxu0 %v2110_v5  ;;  %1394 = vmatpush3.msra.mxu1 %v2110_v5 }
  0xb1   : > { %1360 = vmatprep.subr.mxu0 %v1730_v0  ;;  %1395 = vmatprep.subr.mxu1 %v1730_v0 }
  0xb2   : > { %1361 = vmatpush3.msra.mxu0 %v2116_v10  ;;  %1396 = vmatpush3.msra.mxu1 %v2116_v10 }
  0xb3   : > { %1362 = vmatprep.subr.mxu0 %v1730_v0  ;;  %1397 = vmatprep.subr.mxu1 %v1730_v0 }
  0xb4   : > { %1363 = vmatpush3.msra.mxu0 %v2122_v12  ;;  %1398 = vmatpush3.msra.mxu1 %v2122_v12 }
  0xb5   : > { %1364 = vmatprep.subr.mxu0 %v1730_v0  ;;  %1399 = vmatprep.subr.mxu1 %v1730_v0 }
  0xb6   : > { %1365 = vmatpush3.msra.mxu0 %v2128_v13  ;;  %1400 = vmatpush3.msra.mxu1 %v2128_v13 }
  0xb7   : > { %1366 = vmatprep.subr.mxu0 %v1730_v0  ;;  %1401 = vmatprep.subr.mxu1 %v1730_v0 }
  0xb8   : > { %1367 = vmatpush3.msra.mxu0 %v2134_v14  ;;  %1402 = vmatpush3.msra.mxu1 %v2134_v14 }
  0xb9   : > { %1368 = vmatprep.subr.mxu0 %v1730_v0  ;;  %1403 = vmatprep.subr.mxu1 %v1730_v0 }
  0xba   : > { %1369 = vmatpush3.msra.mxu0 %v2140_v15  ;;  %1404 = vmatpush3.msra.mxu1 %v2140_v15 }
  0xbb   : > { %1370 = vmatprep.subr.mxu0 %v1730_v0  ;;  %1405 = vmatprep.subr.mxu1 %v1730_v0 }
  0xbc   : > { %1371 = vmatpush3.msra.mxu0 %v2146_v16  ;;  %1406 = vmatpush3.msra.mxu1 %v2146_v16 }
  0xbd   : > { %1372 = vmatprep.subr.mxu0 %v1730_v0  ;;  %1407 = vmatprep.subr.mxu1 %v1730_v0 }
  0xbe   : > { %1373 = vmatpush3.msra.mxu0 %v2156_v17  ;;  %1408 = vmatpush3.msra.mxu1 %v2156_v17 }
  0xbf   : > { %1374 = vmatprep.subr.mxu0 %v1730_v0  ;;  %1409 = vmatprep.subr.mxu1 %v1730_v0 }
  0xc0   : > { %1375 = vmatpush3.msra.mxu0 %v2162_v18  ;;  %1410 = vmatpush3.msra.mxu1 %v2162_v18 }
  0xc1   : > { %1376 = vmatprep.subr.mxu0 %v1730_v0  ;;  %1411 = vmatprep.subr.mxu1 %v1730_v0 }
  0xc2   : > { %1377 = vmatpush3.msra.mxu0 %v2168_v19  ;;  %1412 = vmatpush3.msra.mxu1 %v2168_v19 }
  0xc3   : > { %1378 = vmatprep.subr.mxu0 %v1730_v0  ;;  %1413 = vmatprep.subr.mxu1 %v1730_v0 }
  0xc4   : > { %1379 = vmatpush3.msra.mxu0 %v2174_v20  ;;  %1414 = vmatpush3.msra.mxu1 %v2174_v20 }
  0xc5   : > { %1380 = vmatprep.subr.mxu0 %v1730_v0  ;;  %1415 = vmatprep.subr.mxu1 %v1730_v0 }
  0xc6   : > { %1381 = vmatpush3.msra.mxu0 %v2180_v21  ;;  %1416 = vmatpush3.msra.mxu1 %v2180_v21 }
  0xc7   : > { %1382 = vmatprep.subr.mxu0 %v1730_v0  ;;  %1417 = vmatprep.subr.mxu1 %v1730_v0 }
  0xc8   : > { %1383 = vmatpush3.msra.mxu0 %v2186_v22  ;;  %1418 = vmatpush3.msra.mxu1 %v2186_v22 }
  0xc9   : > { %1384 = vmatprep.subr.mxu0 %v1730_v0  ;;  %1419 = vmatprep.subr.mxu1 %v1730_v0 }
  0xca   : > { %1385 = vmatpush3.msra.mxu0 %v2188_v23  ;;  %1386 = vmatprep.mubr.msk.f32.mxu0 %vm1732_vm3, %v1730_v0 }
  0xcb   : > { %1420 = vmatpush3.msra.mxu1 %v2188_v23  ;;  %1421 = vmatprep.mubr.msk.f32.mxu1 %vm1732_vm3, %v1730_v0 }
  0xcc   : > { %1424 = vmatprep.subr.mxu0 %v1730_v0  ;;  %1459 = vmatprep.subr.mxu1 %v1730_v0 }
 0x144   : > { %v355_v24 = vpop.f32.mrf.mxu0  ;;  %v467_v25 = vpop.f32.mrf.mxu1 }
 0x146   : > { %v357_v26 = vpop.f32.mrf.mxu0  ;;  %v469_v27 = vpop.f32.mrf.mxu1 }
 0x14a   : > { %v361_v28 = vpop.f32.mrf.mxu0  ;;  %v473_v29 = vpop.f32.mrf.mxu1 }
 0x14b   : > { %v367_v30 = vadd.f32 %v361_v28, %v357_v26  ;;  %v479_v31 = vadd.f32 %v473_v29, %v469_v27 }
 0x14c   : > { %v363_v32 = vpop.f32.mrf.mxu0  ;;  %v475_v33 = vpop.f32.mrf.mxu1 }
 0x14d   : > { %v366_v34 = vsub.f32 %v355_v24, %v363_v32  ;;  %v478_v35 = vsub.f32 %v467_v25, %v475_v33  ;;  %v721_v36 = vmul.f32 %v367_v30, %v367_v30  ;;  %v799_v37 = vmul.f32 %v479_v31, %v479_v31 }
 0x14f   : > { %v720_v38 = vmul.f32 %v366_v34, %v366_v34  ;;  %v798_v39 = vmul.f32 %v478_v35, %v478_v35 }
 0x151   : > { %v722_v40 = vadd.f32 %v721_v36, %v720_v38  ;;  %v800_v41 = vadd.f32 %v799_v37, %v798_v39 }
 0x153   : > { %1387 = vmatmul.mubr.f32.vlgmr.msra.gmra.mxu0 %v722_v40  ;;  %1422 = vmatmul.mubr.f32.vlgmr.msra.gmra.mxu1 %v800_v41 }
 0x154   : > { %1425 = vmatpush3.msra.mxu0 %v2096_v9  ;;  %1460 = vmatpush3.msra.mxu1 %v2096_v9 }
 0x155   : > { %1426 = vmatprep.subr.mxu0 %v1730_v0  ;;  %1461 = vmatprep.subr.mxu1 %v1730_v0 }
 0x156   : > { %1427 = vmatpush3.msra.mxu0 %v2104_v11  ;;  %1462 = vmatpush3.msra.mxu1 %v2104_v11  ;;  %v1273_v11 = vld [vmem:[%s1938_s30 + $0x2] sm:$0x1] }
 0x157   : > { %1428 = vmatprep.subr.mxu0 %v1730_v0  ;;  %1463 = vmatprep.subr.mxu1 %v1730_v0 }
 0x158   : > { %1429 = vmatpush3.msra.mxu0 %v2110_v5  ;;  %1464 = vmatpush3.msra.mxu1 %v2110_v5 }
 0x159   : > { %1430 = vmatprep.subr.mxu0 %v1730_v0  ;;  %1465 = vmatprep.subr.mxu1 %v1730_v0 }
 0x15a   : > { %1431 = vmatpush3.msra.mxu0 %v2116_v10  ;;  %1466 = vmatpush3.msra.mxu1 %v2116_v10  ;;  %v1275_v10 = vld [vmem:[%s1938_s30 + $0x3] sm:$0x1] }
 0x15b   : > { %1432 = vmatprep.subr.mxu0 %v1730_v0  ;;  %1467 = vmatprep.subr.mxu1 %v1730_v0 }
 0x15c   : > { %1433 = vmatpush3.msra.mxu0 %v2122_v12  ;;  %1468 = vmatpush3.msra.mxu1 %v2122_v12 }
 0x15d   : > { %1434 = vmatprep.subr.mxu0 %v1730_v0  ;;  %1469 = vmatprep.subr.mxu1 %v1730_v0 }
 0x15e   : > { %1435 = vmatpush3.msra.mxu0 %v2128_v13  ;;  %1470 = vmatpush3.msra.mxu1 %v2128_v13 }
 0x15f   : > { %1436 = vmatprep.subr.mxu0 %v1730_v0  ;;  %1471 = vmatprep.subr.mxu1 %v1730_v0 }
 0x160   : > { %1437 = vmatpush3.msra.mxu0 %v2134_v14  ;;  %1472 = vmatpush3.msra.mxu1 %v2134_v14 }
 0x161   : > { %1438 = vmatprep.subr.mxu0 %v1730_v0  ;;  %1473 = vmatprep.subr.mxu1 %v1730_v0 }
 0x162   : > { %1439 = vmatpush3.msra.mxu0 %v2140_v15  ;;  %1474 = vmatpush3.msra.mxu1 %v2140_v15 }
 0x163   : > { %1440 = vmatprep.subr.mxu0 %v1730_v0  ;;  %1475 = vmatprep.subr.mxu1 %v1730_v0 }
 0x164   : > { %1441 = vmatpush3.msra.mxu0 %v2146_v16  ;;  %1476 = vmatpush3.msra.mxu1 %v2146_v16 }
 0x165   : > { %1442 = vmatprep.subr.mxu0 %v1730_v0  ;;  %1477 = vmatprep.subr.mxu1 %v1730_v0 }
 0x166   : > { %1443 = vmatpush3.msra.mxu0 %v2156_v17  ;;  %1478 = vmatpush3.msra.mxu1 %v2156_v17 }
 0x167   : > { %1444 = vmatprep.subr.mxu0 %v1730_v0  ;;  %1479 = vmatprep.subr.mxu1 %v1730_v0 }
 0x168   : > { %v579_v42 = vpop.f32.mrf.mxu0  ;;  %v691_v43 = vpop.f32.mrf.mxu1  ;;  %1445 = vmatpush3.msra.mxu0 %v2162_v18  ;;  %1480 = vmatpush3.msra.mxu1 %v2162_v18 }
 0x169   : > { %1446 = vmatprep.subr.mxu0 %v1730_v0  ;;  %1481 = vmatprep.subr.mxu1 %v1730_v0 }
 0x16a   : > { %v581_v44 = vpop.f32.mrf.mxu0  ;;  %v693_v45 = vpop.f32.mrf.mxu1  ;;  %1447 = vmatpush3.msra.mxu0 %v2168_v19  ;;  %1482 = vmatpush3.msra.mxu1 %v2168_v19 }
 0x16b   : > { %1448 = vmatprep.subr.mxu0 %v1730_v0  ;;  %1483 = vmatprep.subr.mxu1 %v1730_v0 }
 0x16c   : > { %v585_v46 = vpop.f32.mrf.mxu0  ;;  %v697_v47 = vpop.f32.mrf.mxu1  ;;  %1449 = vmatpush3.msra.mxu0 %v2174_v20  ;;  %1484 = vmatpush3.msra.mxu1 %v2174_v20 }
 0x16d   : > { %v591_v48 = vadd.f32 %v585_v46, %v581_v44  ;;  %v703_v49 = vadd.f32 %v697_v47, %v693_v45  ;;  %1450 = vmatprep.subr.mxu0 %v1730_v0  ;;  %1485 = vmatprep.subr.mxu1 %v1730_v0 }
 0x16e   : > { %v587_v50 = vpop.f32.mrf.mxu0  ;;  %v699_v51 = vpop.f32.mrf.mxu1  ;;  %1451 = vmatpush3.msra.mxu0 %v2180_v21  ;;  %1486 = vmatpush3.msra.mxu1 %v2180_v21 }
 0x16f   : > { %v590_v52 = vsub.f32 %v579_v42, %v587_v50  ;;  %v702_v53 = vsub.f32 %v691_v43, %v699_v51  ;;  %1452 = vmatprep.subr.mxu0 %v1730_v0  ;;  %v879_v54 = vmul.f32 %v591_v48, %v591_v48  ;;  %1487 = vmatprep.subr.mxu1 %v1730_v0 }
 0x170   : > { %1453 = vmatpush3.msra.mxu0 %v2186_v22  ;;  %v959_v55 = vmul.f32 %v703_v49, %v703_v49  ;;  %1488 = vmatpush3.msra.mxu1 %v2186_v22 }
 0x171   : > { %v878_v56 = vmul.f32 %v590_v52, %v590_v52  ;;  %v958_v57 = vmul.f32 %v702_v53, %v702_v53  ;;  %1454 = vmatprep.subr.mxu0 %v1730_v0  ;;  %1489 = vmatprep.subr.mxu1 %v1730_v0 }
 0x172   : > { %1455 = vmatpush3.msra.mxu0 %v2188_v23  ;;  %1456 = vmatprep.mubr.msk.f32.mxu0 %vm1732_vm3, %v1730_v0 }
 0x173   : > { %v880_v58 = vadd.f32 %v879_v54, %v878_v56  ;;  %v960_v59 = vadd.f32 %v959_v55, %v958_v57  ;;  %1490 = vmatpush3.msra.mxu1 %v2188_v23  ;;  %1491 = vmatprep.mubr.msk.f32.mxu1 %vm1732_vm3, %v1730_v0 }
 0x175   : > { %1457 = vmatmul.mubr.f32.vlgmr.msra.gmra.mxu0 %v880_v58  ;;  %1492 = vmatmul.mubr.f32.vlgmr.msra.gmra.mxu1 %v960_v59 }
 0x213   : > { %v789_v60 = vpop.f32.mrf.mxu0  ;;  %v867_v62 = vpop.f32.mrf.mxu1 }
 0x214   : > { %v794_v1 = vadd.f32 1.0, %v789_v60  ;;  %v873_v2 = vadd.f32 1.0, %v867_v62 }
 0x215   : > { %v1388_v3 = vpop.f32.mrf.mxu0  ;;  %v1423_v4 = vpop.f32.mrf.mxu1 }
 0x216   : > { %v795_v6 = vmul.f32 %v794_v1, %v793_v61  ;;  %v874_v7 = vmul.f32 %v1271_v63, %v873_v2 }
 0x218   : > { %v796_v8 = vmul.f32 0.5, %v795_v6  ;;  %v875_v9 = vmul.f32 0.5, %v874_v7 }
 0x21a   : > { %797 = vst [vmem:[%s241_s27] sm:$0x1] %v796_v8  ;;  %1272 = vst [vmem:[%s241_s27 + $0x1] sm:$0x1] %v875_v9 }
 0x235   : > { %v947_v0 = vpop.f32.mrf.mxu0  ;;  %v1027_v5 = vpop.f32.mrf.mxu1 }
 0x236   : > { %v953_v12 = vadd.f32 1.0, %v947_v0  ;;  %v1033_v13 = vadd.f32 1.0, %v1027_v5 }
 0x237   : > { %v1458_v14 = vpop.f32.mrf.mxu0  ;;  %v1493_v15 = vpop.f32.mrf.mxu1 }
 0x238   : > { %v954_v16 = vmul.f32 %v1273_v11, %v953_v12  ;;  %v1034_v17 = vmul.f32 %v1275_v10, %v1033_v13 }
 0x23a   : > { %v955_v18 = vmul.f32 0.5, %v954_v16  ;;  %v1035_v19 = vmul.f32 0.5, %v1034_v17 }
 0x23c   : > { %1274 = vst [vmem:[%s241_s27 + $0x2] sm:$0x1] %v955_v18  ;;  %1276 = vst [vmem:[%s241_s27 + $0x3] sm:$0x1] %v1035_v19 }
 0x23d   : > { %1661 = shalt.err (!%p1658_p3)
}
 0x23e   : > { %s1662_s25 = scalar_lea.hbm %s2280_s5, 64  ;;  %s1666_s10 = scalar_lea.hbm %s2326_s3, 128 }
 0x23f   : > { %p1663_p12 = scmp.ne.s32.totalorder %s2280_s5, %s1662_s25  ;;  %p1667_p2 = scmp.lt.s32.totalorder %s2280_s5, %s2326_s3 }
 0x240   : > { %p1668_p6 = scmp.lt.s32.totalorder %s1666_s10, %s1662_s25 }
 0x241   : > { %p1664_p13 = pnand %p1663_p12, %p2346_p9 }
 0x242   : > { %p1669_p4 = por %p1668_p6, %p1667_p2 }
 0x243   : > { %p1665_p10 = pneg %p1664_p13 }
 0x245   : > { %p1670_p5 = pnand %p1669_p4, %p1665_p10 }
 0x247   : > { %1673 = shalt.err (!%p1670_p5)
}
 0x248   : > { %s1734_s30 = smov 16   ;;  %s1735_s27 = smov 1  }
 0x249   : > { %1502 = dma.vmem_to_hbm [thread:$0]  (%p2346_p9), %s2275_s28, 64, %s2280_s5, %s1039_s9, %s1734_s30, %s1734_s30, %s1735_s27  }
 0x24a PF: > { %s1067_s7 = sand.u32 1, %s1708_s12   ;;  %p2347_p8 = scmp.ne.s32.totalorder %s2335_s26, 0 }
 0x24b   : > { %p2348_p1 = scmp.ge.s32.totalorder %s1720_s15, 2  ;;  %s1068_s17 = scalar_lea.sflag [#allocation4], %s1067_s7 }
 0x24d   : > { %p1516_p7 = pnand %p2348_p1, %p2347_p8 }
 0x24f   : > { %p1517_p0 = pneg %p1516_p7 }
 0x251   : > { %1703 = dma.done.wait (%p1517_p0), %s1068_s17, 64  }
 0x252   : > { %1705 = vsyncadd (%p1517_p0), %s1068_s17, 4294967232  ;;  %p17_p11 = scmp.ge.s32.totalorder %s1777_s16, 4   ;;  %s2349_s12 = smov %s1712_s13 }
 0x253   : > { %s2350_s13 = smov %s1716_s14  ;;  %s2351_s14 = smov %s1788_s19 }
 0x254   : > { %s2352_s15 = smov %s1777_s16  ;;  %19 = sbr.rel (!%p17_p11) target bundleno = 6 (0x6), region = 101 }
 0x259   :  { %1073 = vsyncpa [#allocation3], 1 }
 0x25a   :  { %1075 = vsyncpa [#allocation3 + $0x1], 1 }
 0x25b   :  { %1076 = vsyncpa [#allocation6], 1 }
 0x25c   :  { %1077 = vsyncpa [#allocation4], 1 }
 0x25d   :  { %1079 = vsyncpa [#allocation4 + $0x1], 1 }

</bundles_post_ra>
